<compile_context>
chip_gen: v7x
topology: tpu7x:2x2x1
jax: 0.10.0
libtpu: 0.0.40
codegen_flags: <defaults>
</compile_context>

<pallas_src>
import math
import functools

import jax
import jax.numpy as jnp
from jax import lax
from jax.experimental import pallas as pl
from jax.experimental.pallas import tpu as pltpu


@functools.lru_cache(maxsize=1)
def _vmem_limit_bytes():
    """Per-generation VMEM budget: v7x has 64 MiB/TC, v5e/v6e have 128 MiB."""
    try:
        kind = jax.devices()[0].device_kind.lower()
    except Exception:
        kind = ""
    if "v7" in kind:
        return 48 * 1024 * 1024
    if any(g in kind for g in ("v4", "v5", "v6")):
        return 96 * 1024 * 1024
    return 32 * 1024 * 1024  # conservative fallback for unknown / older generations


def _pick_tile(dim, target, align):
    """Largest tile <= target that divides `dim` and is a multiple of `align`;
    falls back to the full dim (always a legal block size)."""
    t = min(target, dim)
    t = (t // align) * align
    while t >= align:
        if dim % t == 0:
            return t
        t -= align
    return dim


def _sublane_align(dtype):
    return 16 if jnp.dtype(dtype).itemsize <= 2 else 8


# ----------------------------- Tiled linear (x @ W + b) kernel -----------------------------

def _linear_kernel(x_ref, w_ref, b_ref, o_ref, acc_ref):
    k = pl.program_id(2)

    @pl.when(k == 0)
    def _init():
        acc_ref[...] = jnp.zeros_like(acc_ref)

    x = x_ref[...].astype(w_ref.dtype)          # cast f32 inputs to the MXU dtype in-VMEM
    acc_ref[...] += jnp.dot(x, w_ref[...], preferred_element_type=jnp.float32)

    @pl.when(k == pl.num_programs(2) - 1)
    def _fini():
        o_ref[...] = (acc_ref[...] + b_ref[...]).astype(o_ref.dtype)


def pallas_linear(x, w, b, *, out_dtype=jnp.float32, tm=512, tn=512, tk=512):
    """x: (M, K), w: (K, N), b: (1, N) f32. Returns (M, N) in out_dtype = x @ w + b."""
    M, K = x.shape
    N = w.shape[1]
    btm = _pick_tile(M, tm, _sublane_align(x.dtype))
    btn = _pick_tile(N, tn, 128)
    btk = _pick_tile(K, tk, 128)

    return pl.pallas_call(
        _linear_kernel,
        out_shape=jax.ShapeDtypeStruct((M, N), out_dtype),
        grid_spec=pltpu.PrefetchScalarGridSpec(
            num_scalar_prefetch=0,
            grid=(M // btm, N // btn, K // btk),
            in_specs=[
                pl.BlockSpec((btm, btk), lambda i, j, k: (i, k)),
                pl.BlockSpec((btk, btn), lambda i, j, k: (k, j)),
                pl.BlockSpec((1, btn), lambda i, j, k: (0, j)),
            ],
            out_specs=pl.BlockSpec((btm, btn), lambda i, j, k: (i, j)),
            scratch_shapes=[pltpu.VMEM((btm, btn), jnp.float32)],
        ),
        compiler_params=pltpu.CompilerParams(
            dimension_semantics=("parallel", "parallel", "arbitrary"),
            vmem_limit_bytes=_vmem_limit_bytes(),
        ),
    )(x, w, b)


# ------------------------ Flash-style multi-head attention kernels -------------------------

def _mha_headgrid_kernel(*refs, has_mask, approx_recip):
    """Heads as a grid axis: q/k/v tiles are lane-aligned (bt, d_k) slabs."""
    if has_mask:
        q_ref, k_ref, v_ref, mask_ref, o_ref, m_ref, l_ref, acc_ref = refs
    else:
        q_ref, k_ref, v_ref, o_ref, m_ref, l_ref, acc_ref = refs
        mask_ref = None

    ki = pl.program_id(3)

    @pl.when(ki == 0)
    def _init():
        m_ref[...] = jnp.full(m_ref.shape, -1e30, m_ref.dtype)
        l_ref[...] = jnp.zeros_like(l_ref)
        acc_ref[...] = jnp.zeros_like(acc_ref)

    q = q_ref[0]                                  # (tq, d_k)  (1/sqrt(d_k) folded into W_q)
    k = k_ref[0]                                  # (tk, d_k)
    v = v_ref[0]                                  # (tk, d_k)

    # Contract on the last dim of both operands: no explicit K transpose.
    s = lax.dot_general(q, k, (((1,), (1,)), ((), ())),
                        preferred_element_type=jnp.float32)          # (tq, tk) f32
    if has_mask:
        s = jnp.where(mask_ref[0].astype(jnp.int32) == 0, jnp.float32(-1e9), s)

    m_prev = m_ref[...]
    m_new = jnp.maximum(m_prev, jnp.max(s, axis=-1, keepdims=True))
    alpha = jnp.exp(m_prev - m_new)
    p = jnp.exp(s - m_new)
    l_ref[...] = alpha * l_ref[...] + jnp.sum(p, axis=-1, keepdims=True)
    acc_ref[...] = alpha * acc_ref[...] + lax.dot_general(
        p.astype(v.dtype), v, (((1,), (0,)), ((), ())),
        preferred_element_type=jnp.float32)
    m_ref[...] = m_new

    @pl.when(ki == pl.num_programs(3) - 1)
    def _fini():
        inv_l = pl.reciprocal(l_ref[...], approx=approx_recip)
        o_ref[0] = (acc_ref[...] * inv_l).astype(o_ref.dtype)


def _mha_headloop_kernel(*refs, h, d_k, has_mask, approx_recip):
    """General d_k path: heads split by lane-slicing the d_model-wide tiles in-VMEM."""
    if has_mask:
        q_ref, k_ref, v_ref, mask_ref, o_ref, m_ref, l_ref, acc_ref = refs
    else:
        q_ref, k_ref, v_ref, o_ref, m_ref, l_ref, acc_ref = refs
        mask_ref = None

    ki = pl.program_id(2)

    @pl.when(ki == 0)
    def _init():
        m_ref[...] = jnp.full(m_ref.shape, -1e30, m_ref.dtype)
        l_ref[...] = jnp.zeros_like(l_ref)
        acc_ref[...] = jnp.zeros_like(acc_ref)

    q = q_ref[0]                                  # (tq, d_model) compute dtype
    k = k_ref[0]                                  # (tk, d_model)
    v = v_ref[0]                                  # (tk, d_model)

    if has_mask:
        masked = mask_ref[0].astype(jnp.int32) == 0   # (tq, tk) bool

    for hd in range(h):
        lo = hd * d_k
        qh = q[:, lo:lo + d_k]
        kh = k[:, lo:lo + d_k]
        vh = v[:, lo:lo + d_k]

        s = lax.dot_general(qh, kh, (((1,), (1,)), ((), ())),
                            preferred_element_type=jnp.float32)      # (tq, tk) f32
        if has_mask:
            s = jnp.where(masked, jnp.float32(-1e9), s)

        m_prev = m_ref[hd]                                           # (tq, 1)
        m_new = jnp.maximum(m_prev, jnp.max(s, axis=-1, keepdims=True))
        alpha = jnp.exp(m_prev - m_new)
        p = jnp.exp(s - m_new)
        l_ref[hd] = alpha * l_ref[hd] + jnp.sum(p, axis=-1, keepdims=True)
        acc_ref[hd] = alpha * acc_ref[hd] + lax.dot_general(
            p.astype(vh.dtype), vh, (((1,), (0,)), ((), ())),
            preferred_element_type=jnp.float32)
        m_ref[hd] = m_new

    @pl.when(ki == pl.num_programs(2) - 1)
    def _fini():
        # One lane-dense (tq, d_model) store instead of h masked d_k-wide stores.
        outs = []
        for hd in range(h):
            inv_l = pl.reciprocal(l_ref[hd], approx=approx_recip)
            outs.append(acc_ref[hd] * inv_l)
        o_ref[0] = jnp.concatenate(outs, axis=-1).astype(o_ref.dtype)


def pallas_attention(q_arr, k_arr, v_arr, mask, h, d_model, *,
                     q_col=0, k_col=0, v_col=0, out_dtype=jnp.float32,
                     tq=512, tk=512):
    """q_arr/k_arr/v_arr: (B, S, C) where C is d_model or 3*d_model (fused qkv); the
    d_model-wide column third used for Q/K/V is chosen with q_col/k_col/v_col so no HBM
    slice copies are ever made. mask: (B, Sq, Sk) int8/int or None.
    Returns the merged context (B, Sq, d_model) in out_dtype."""
    B, Sq, _ = q_arr.shape
    Sk = k_arr.shape[1]
    d_k = d_model // h
    btq = _pick_tile(Sq, tq, _sublane_align(q_arr.dtype))
    btk = _pick_tile(Sk, tk, 128)
    has_mask = mask is not None
    approx_recip = q_arr.dtype != jnp.float32
    out_shape = jax.ShapeDtypeStruct((B, Sq, d_model), out_dtype)
    compiler = lambda sem: pltpu.CompilerParams(
        dimension_semantics=sem, vmem_limit_bytes=_vmem_limit_bytes())

    if d_k % 128 == 0:
        # Heads as a grid axis -> lane-aligned tiles, no in-kernel head loop.
        qb, kb, vb = q_col * h, k_col * h, v_col * h
        in_specs = [
            pl.BlockSpec((1, btq, d_k), lambda b, hd, qi, ki: (b, qi, qb + hd)),
            pl.BlockSpec((1, btk, d_k), lambda b, hd, qi, ki: (b, ki, kb + hd)),
            pl.BlockSpec((1, btk, d_k), lambda b, hd, qi, ki: (b, ki, vb + hd)),
        ]
        args = [q_arr, k_arr, v_arr]
        if has_mask:
            in_specs.append(pl.BlockSpec((1, btq, btk),
                                         lambda b, hd, qi, ki: (b, qi, ki)))
            args.append(mask)
        kernel = functools.partial(_mha_headgrid_kernel,
                                   has_mask=has_mask, approx_recip=approx_recip)
        return pl.pallas_call(
            kernel,
            out_shape=out_shape,
            grid_spec=pltpu.PrefetchScalarGridSpec(
                num_scalar_prefetch=0,
                grid=(B, h, Sq // btq, Sk // btk),
                in_specs=in_specs,
                out_specs=pl.BlockSpec((1, btq, d_k), lambda b, hd, qi, ki: (b, qi, hd)),
                scratch_shapes=[
                    pltpu.VMEM((btq, 1), jnp.float32),     # running max
                    pltpu.VMEM((btq, 1), jnp.float32),     # running sum
                    pltpu.VMEM((btq, d_k), jnp.float32),   # running context
                ],
            ),
            compiler_params=compiler(("parallel", "parallel", "parallel", "arbitrary")),
        )(*args)

    # General d_k path (heads sliced in-VMEM from d_model-wide tiles).
    in_specs = [
        pl.BlockSpec((1, btq, d_model), lambda b, qi, ki: (b, qi, q_col)),
        pl.BlockSpec((1, btk, d_model), lambda b, qi, ki: (b, ki, k_col)),
        pl.BlockSpec((1, btk, d_model), lambda b, qi, ki: (b, ki, v_col)),
    ]
    args = [q_arr, k_arr, v_arr]
    if has_mask:
        in_specs.append(pl.BlockSpec((1, btq, btk), lambda b, qi, ki: (b, qi, ki)))
        args.append(mask)
    kernel = functools.partial(_mha_headloop_kernel, h=h, d_k=d_k,
                               has_mask=has_mask, approx_recip=approx_recip)
    return pl.pallas_call(
        kernel,
        out_shape=out_shape,
        grid_spec=pltpu.PrefetchScalarGridSpec(
            num_scalar_prefetch=0,
            grid=(B, Sq // btq, Sk // btk),
            in_specs=in_specs,
            out_specs=pl.BlockSpec((1, btq, d_model), lambda b, qi, ki: (b, qi, 0)),
            scratch_shapes=[
                pltpu.VMEM((h, btq, 1), jnp.float32),
                pltpu.VMEM((h, btq, 1), jnp.float32),
                pltpu.VMEM((h, btq, d_k), jnp.float32),
            ],
        ),
        compiler_params=compiler(("parallel", "parallel", "arbitrary")),
    )(*args)


# ------------------------------ MultiHeadedAttention forward -------------------------------

def init_params(key, h, d_model):
    """4 x nn.Linear(d_model, d_model), PyTorch-style uniform(-1/sqrt(in), 1/sqrt(in))."""
    params = []
    bound = 1.0 / math.sqrt(d_model)
    for i in range(4):
        kw, kb = jax.random.split(jax.random.fold_in(key, i))
        w = jax.random.uniform(kw, (d_model, d_model), jnp.float32, -bound, bound)  # (out, in)
        b = jax.random.uniform(kb, (d_model,), jnp.float32, -bound, bound)
        params.append((w, b))
    return params


def prepare_params(params, h, *, compute_dtype=jnp.bfloat16):
    """One-time weight prep: fold 1/sqrt(d_k) into W_q/b_q, build the fused QKV weight,
    transpose to (in, out), and cast weights to the compute dtype (biases stay f32)."""
    (wq, bq), (wk, bk), (wv, bv), (wo, bo) = params
    d_model = wq.shape[0]
    d_k = d_model // h
    scale = 1.0 / math.sqrt(d_k)
    wq_s, bq_s = wq * scale, bq * scale
    cd = compute_dtype
    f32 = jnp.float32
    return dict(
        w_qkv=jnp.concatenate([wq_s.T, wk.T, wv.T], axis=1).astype(cd),  # (d_model, 3*d_model)
        b_qkv=jnp.concatenate([bq_s, bk, bv])[None, :].astype(f32),      # (1, 3*d_model)
        wq_t=wq_s.T.astype(cd), bq=bq_s[None, :].astype(f32),
        wk_t=wk.T.astype(cd),   bk=bk[None, :].astype(f32),
        wv_t=wv.T.astype(cd),   bv=bv[None, :].astype(f32),
        wo_t=wo.T.astype(cd),   bo=bo[None, :].astype(f32),
    )


@functools.partial(jax.jit, static_argnames=("h", "self_attn"))
def multi_headed_attention(prepped, query, key, value, mask, *, h, self_attn=False):
    """query/key/value: (B, S, d_model) f32; mask: (B, Sq, Sk) int or None.
    Returns (B, Sq, d_model) f32 (eval-mode forward of MultiHeadedAttention)."""
    B, Sq, d_model = query.shape
    cd = prepped["wo_t"].dtype                       # compute dtype (bf16 or f32)
    if mask is not None:
        mask = mask.astype(jnp.int8)                 # 4x less mask DMA than int32

    # Fused QKV GEMM + in-BlockSpec column selection needs d_model-aligned column blocks.
    if self_attn and d_model % 128 == 0:
        qkv = pallas_linear(query.reshape(B * Sq, d_model),
                            prepped["w_qkv"], prepped["b_qkv"],
                            out_dtype=cd).reshape(B, Sq, 3 * d_model)
        ctx = pallas_attention(qkv, qkv, qkv, mask, h, d_model,
                               q_col=0, k_col=1, v_col=2, out_dtype=cd)
    else:
        def proj(x, wt, b):
            Bx, Sx, _ = x.shape
            return pallas_linear(x.reshape(Bx * Sx, d_model), wt, b,
                                 out_dtype=cd).reshape(Bx, Sx, d_model)
        q = proj(query, prepped["wq_t"], prepped["bq"])
        k = proj(key,   prepped["wk_t"], prepped["bk"])
        v = proj(value, prepped["wv_t"], prepped["bv"])
        ctx = pallas_attention(q, k, v, mask, h, d_model, out_dtype=cd)

    out = pallas_linear(ctx.reshape(B * Sq, d_model), prepped["wo_t"], prepped["bo"],
                        out_dtype=jnp.float32)
    return out.reshape(B, Sq, d_model)


# --------------------------------------- reference -----------------------------------------

def reference(params, query, key, value, mask, h):
    B, Sq, d_model = query.shape
    d_k = d_model // h

    def lin(p, x):
        w, b = p
        return x @ w.T + b

    def split(x):
        Bx, Sx, _ = x.shape
        return x.reshape(Bx, Sx, h, d_k).transpose(0, 2, 1, 3)

    q = split(lin(params[0], query))
    k = split(lin(params[1], key))
    v = split(lin(params[2], value))
    scores = jnp.einsum("bhqd,bhkd->bhqk", q, k) / math.sqrt(d_k)
    if mask is not None:
        scores = jnp.where(mask[:, None, :, :] == 0, -1e9, scores)
    p = jax.nn.softmax(scores, axis=-1)
    ctx = jnp.einsum("bhqk,bhkd->bhqd", p, v)
    x = ctx.transpose(0, 2, 1, 3).reshape(B, Sq, d_model)
    return lin(params[3], x)


# ----------------------------------------- main --------------------------------------------

if __name__ == "__main__":
    root = jax.random.PRNGKey(0)
    kx, kq, kk, kv, kp, kp2, kx2 = jax.random.split(root, 7)

    # --- Test 1: self-attention, bf16 compute, head-loop attention path (d_k=8) ---
    B, S, d_model, h = 2, 8, 32, 4
    params = init_params(kp, h, d_model)
    prepped_bf16 = prepare_params(params, h, compute_dtype=jnp.bfloat16)
    mask = jnp.tril(jnp.ones((S, S), jnp.int32))[None].repeat(B, axis=0)  # causal, per batch
    x = jax.random.normal(kx, (B, S, d_model), jnp.float32)

    out1 = multi_headed_attention(prepped_bf16, x, x, x, mask, h=h, self_attn=True)
    out1 = jax.block_until_ready(out1)
    ref1 = reference(params, x, x, x, mask, h)
    assert out1.shape == (B, S, d_model)
    assert jnp.allclose(out1, ref1, atol=7.5e-2, rtol=7.5e-2), \
        float(jnp.max(jnp.abs(out1 - ref1)))

    # --- Test 2: cross-attention, f32 compute, tight tolerance ---
    prepped_f32 = prepare_params(params, h, compute_dtype=jnp.float32)
    query = jax.random.normal(kq, (B, S, d_model), jnp.float32)
    key = jax.random.normal(kk, (B, S, d_model), jnp.float32)
    value = jax.random.normal(kv, (B, S, d_model), jnp.float32)
    out2 = multi_headed_attention(prepped_f32, query, key, value, mask, h=h, self_attn=False)
    out2 = jax.block_until_ready(out2)
    ref2 = reference(params, query, key, value, mask, h)
    assert out2.shape == (B, S, d_model)
    assert jnp.allclose(out2, ref2, atol=1e-4, rtol=1e-4), \
        float(jnp.max(jnp.abs(out2 - ref2)))

    # --- Test 3: self-attention with d_model % 128 == 0 -> fused QKV + head-grid path ---
    B3, S3, dm3, h3 = 2, 8, 256, 2          # d_k = 128
    params3 = init_params(kp2, h3, dm3)
    prepped3 = prepare_params(params3, h3, compute_dtype=jnp.bfloat16)
    mask3 = jnp.tril(jnp.ones((S3, S3), jnp.int32))[None].repeat(B3, axis=0)
    x3 = jax.random.normal(kx2, (B3, S3, dm3), jnp.float32)
    out3 = multi_headed_attention(prepped3, x3, x3, x3, mask3, h=h3, self_attn=True)
    out3 = jax.block_until_ready(out3)
    ref3 = reference(params3, x3, x3, x3, mask3, h3)
    assert out3.shape == (B3, S3, dm3)
    assert jnp.allclose(out3, ref3, atol=1.5e-1, rtol=1.5e-1), \
        float(jnp.max(jnp.abs(out3 - ref3)))

    print("KERNEL_OK")
</pallas_src>

<mosaic_0001>
module attributes {stable_mosaic.version = 11 : i64} {
  func.func @_linear_kernel(%arg0: i32, %arg1: i32, %arg2: i32, %arg3: memref<16x32xbf16, #tpu.memory_space<vmem>>, %arg4: memref<32x32xbf16, #tpu.memory_space<vmem>>, %arg5: memref<1x32xf32, #tpu.memory_space<vmem>>, %arg6: memref<16x32xf32, #tpu.memory_space<vmem>>, %arg7: memref<16x32xf32, #tpu.memory_space<vmem>>) attributes {dimension_semantics = [#tpu.dimension_semantics<parallel>, #tpu.dimension_semantics<parallel>, #tpu.dimension_semantics<arbitrary>], iteration_bounds = array<i64: 1, 1, 1>, scalar_prefetch = 0 : i64, scratch_operands = 1 : i64, tpu.core_type = #tpu.core_type<tc>, window_params = [{transform_indices = @transform_0, window_bounds = array<i64: 16, 32>}, {transform_indices = @transform_1, window_bounds = array<i64: 32, 32>}, {transform_indices = @transform_2, window_bounds = array<i64: 1, 32>}, {transform_indices = @transform_3, window_bounds = array<i64: 16, 32>}]} {
    %c0_i32 = arith.constant 0 : i32
    %0 = arith.cmpi eq, %arg2, %c0_i32 : i32
    %1 = arith.extui %0 : i1 to i32
    %c0_i32_0 = arith.constant 0 : i32
    %2 = arith.cmpi ne, %1, %c0_i32_0 : i32
    scf.if %2 {
      %cst_10 = arith.constant 0.000000e+00 : f32
      %12 = vector.broadcast %cst_10 : f32 to vector<16x32xf32>
      %c0_11 = arith.constant 0 : index
      %c0_12 = arith.constant 0 : index
      %13 = vector.load %arg7[%c0_11, %c0_12] : memref<16x32xf32, #tpu.memory_space<vmem>>, vector<16x32xf32>
      tpu.vector_store %arg7[%c0_11, %c0_12], %12 {strides = array<i32>} : memref<16x32xf32, #tpu.memory_space<vmem>>, vector<16x32xf32>,
    } else {
    }
    %c0 = arith.constant 0 : index
    %c0_1 = arith.constant 0 : index
    %3 = vector.load %arg3[%c0, %c0_1] : memref<16x32xbf16, #tpu.memory_space<vmem>>, vector<16x32xbf16>
    %c0_2 = arith.constant 0 : index
    %c0_3 = arith.constant 0 : index
    %4 = vector.load %arg7[%c0_2, %c0_3] : memref<16x32xf32, #tpu.memory_space<vmem>>, vector<16x32xf32>
    %c0_4 = arith.constant 0 : index
    %c0_5 = arith.constant 0 : index
    %5 = vector.load %arg4[%c0_4, %c0_5] : memref<32x32xbf16, #tpu.memory_space<vmem>>, vector<32x32xbf16>
    %cst = arith.constant dense<0.000000e+00> : vector<16x32xf32>
    %6 = tpu.matmul %3, %5, %cst {dimension_numbers = #tpu.dot_dimension_numbers<[1], [0], [0], [1], [0, 0, 1, 1], [], []>} : vector<16x32xbf16>, vector<32x32xbf16>, vector<16x32xf32> -> vector<16x32xf32>
    %7 = arith.addf %4, %6 : vector<16x32xf32>
    %c0_6 = arith.constant 0 : index
    %c0_7 = arith.constant 0 : index
    %8 = vector.load %arg7[%c0_6, %c0_7] : memref<16x32xf32, #tpu.memory_space<vmem>>, vector<16x32xf32>
    tpu.vector_store %arg7[%c0_6, %c0_7], %7 {strides = array<i32>} : memref<16x32xf32, #tpu.memory_space<vmem>>, vector<16x32xf32>,
    %c0_i32_8 = arith.constant 0 : i32
    %9 = arith.cmpi eq, %arg2, %c0_i32_8 : i32
    %10 = arith.extui %9 : i1 to i32
    %c0_i32_9 = arith.constant 0 : i32
    %11 = arith.cmpi ne, %10, %c0_i32_9 : i32
    scf.if %11 {
      %c0_10 = arith.constant 0 : index
      %c0_11 = arith.constant 0 : index
      %12 = vector.load %arg7[%c0_10, %c0_11] : memref<16x32xf32, #tpu.memory_space<vmem>>, vector<16x32xf32>
      %c0_12 = arith.constant 0 : index
      %c0_13 = arith.constant 0 : index
      %13 = vector.load %arg5[%c0_12, %c0_13] : memref<1x32xf32, #tpu.memory_space<vmem>>, vector<1x32xf32>
      %14 = vector.broadcast %13 : vector<1x32xf32> to vector<16x32xf32>
      %15 = arith.addf %12, %14 : vector<16x32xf32>
      %c0_14 = arith.constant 0 : index
      %c0_15 = arith.constant 0 : index
      %16 = vector.load %arg6[%c0_14, %c0_15] : memref<16x32xf32, #tpu.memory_space<vmem>>, vector<16x32xf32>
      tpu.vector_store %arg6[%c0_14, %c0_15], %15 {strides = array<i32>} : memref<16x32xf32, #tpu.memory_space<vmem>>, vector<16x32xf32>,
    } else {
    }
    return
  }
  func.func @transform_0(%arg0: i32, %arg1: i32, %arg2: i32) -> (i32, i32) {
    %c0_i32 = arith.constant 0 : i32
    return %arg0, %arg2 : i32, i32
  }
  func.func @transform_1(%arg0: i32, %arg1: i32, %arg2: i32) -> (i32, i32) {
    %c0_i32 = arith.constant 0 : i32
    return %arg2, %arg1 : i32, i32
  }
  func.func @transform_2(%arg0: i32, %arg1: i32, %arg2: i32) -> (i32, i32) {
    %c0_i32 = arith.constant 0 : i32
    %c0_i32_0 = arith.constant 0 : i32
    return %c0_i32, %arg1 : i32, i32
  }
  func.func @transform_3(%arg0: i32, %arg1: i32, %arg2: i32) -> (i32, i32) {
    %c0_i32 = arith.constant 0 : i32
    return %arg0, %arg1 : i32, i32
  }
}

module attributes {stable_mosaic.version = 11 : i64} {
  func.func @_linear_kernel(%arg0: i32, %arg1: i32, %arg2: i32, %arg3: memref<16x32xf32, #tpu.memory_space<vmem>>, %arg4: memref<32x32xbf16, #tpu.memory_space<vmem>>, %arg5: memref<1x32xf32, #tpu.memory_space<vmem>>, %arg6: memref<16x32xbf16, #tpu.memory_space<vmem>>, %arg7: memref<16x32xf32, #tpu.memory_space<vmem>>) attributes {dimension_semantics = [#tpu.dimension_semantics<parallel>, #tpu.dimension_semantics<parallel>, #tpu.dimension_semantics<arbitrary>], iteration_bounds = array<i64: 1, 1, 1>, scalar_prefetch = 0 : i64, scratch_operands = 1 : i64, tpu.core_type = #tpu.core_type<tc>, window_params = [{transform_indices = @transform_0, window_bounds = array<i64: 16, 32>}, {transform_indices = @transform_1, window_bounds = array<i64: 32, 32>}, {transform_indices = @transform_2, window_bounds = array<i64: 1, 32>}, {transform_indices = @transform_3, window_bounds = array<i64: 16, 32>}]} {
    %c0_i32 = arith.constant 0 : i32
    %0 = arith.cmpi eq, %arg2, %c0_i32 : i32
    %1 = arith.extui %0 : i1 to i32
    %c0_i32_0 = arith.constant 0 : i32
    %2 = arith.cmpi ne, %1, %c0_i32_0 : i32
    scf.if %2 {
      %cst_10 = arith.constant 0.000000e+00 : f32
      %13 = vector.broadcast %cst_10 : f32 to vector<16x32xf32>
      %c0_11 = arith.constant 0 : index
      %c0_12 = arith.constant 0 : index
      %14 = vector.load %arg7[%c0_11, %c0_12] : memref<16x32xf32, #tpu.memory_space<vmem>>, vector<16x32xf32>
      tpu.vector_store %arg7[%c0_11, %c0_12], %13 {strides = array<i32>} : memref<16x32xf32, #tpu.memory_space<vmem>>, vector<16x32xf32>,
    } else {
    }
    %c0 = arith.constant 0 : index
    %c0_1 = arith.constant 0 : index
    %3 = vector.load %arg3[%c0, %c0_1] : memref<16x32xf32, #tpu.memory_space<vmem>>, vector<16x32xf32>
    %4 = arith.truncf %3 : vector<16x32xf32> to vector<16x32xbf16>
    %c0_2 = arith.constant 0 : index
    %c0_3 = arith.constant 0 : index
    %5 = vector.load %arg7[%c0_2, %c0_3] : memref<16x32xf32, #tpu.memory_space<vmem>>, vector<16x32xf32>
    %c0_4 = arith.constant 0 : index
    %c0_5 = arith.constant 0 : index
    %6 = vector.load %arg4[%c0_4, %c0_5] : memref<32x32xbf16, #tpu.memory_space<vmem>>, vector<32x32xbf16>
    %cst = arith.constant dense<0.000000e+00> : vector<16x32xf32>
    %7 = tpu.matmul %4, %6, %cst {dimension_numbers = #tpu.dot_dimension_numbers<[1], [0], [0], [1], [0, 0, 1, 1], [], []>} : vector<16x32xbf16>, vector<32x32xbf16>, vector<16x32xf32> -> vector<16x32xf32>
    %8 = arith.addf %5, %7 : vector<16x32xf32>
    %c0_6 = arith.constant 0 : index
    %c0_7 = arith.constant 0 : index
    %9 = vector.load %arg7[%c0_6, %c0_7] : memref<16x32xf32, #tpu.memory_space<vmem>>, vector<16x32xf32>
    tpu.vector_store %arg7[%c0_6, %c0_7], %8 {strides = array<i32>} : memref<16x32xf32, #tpu.memory_space<vmem>>, vector<16x32xf32>,
    %c0_i32_8 = arith.constant 0 : i32
    %10 = arith.cmpi eq, %arg2, %c0_i32_8 : i32
    %11 = arith.extui %10 : i1 to i32
    %c0_i32_9 = arith.constant 0 : i32
    %12 = arith.cmpi ne, %11, %c0_i32_9 : i32
    scf.if %12 {
      %c0_10 = arith.constant 0 : index
      %c0_11 = arith.constant 0 : index
      %13 = vector.load %arg7[%c0_10, %c0_11] : memref<16x32xf32, #tpu.memory_space<vmem>>, vector<16x32xf32>
      %c0_12 = arith.constant 0 : index
      %c0_13 = arith.constant 0 : index
      %14 = vector.load %arg5[%c0_12, %c0_13] : memref<1x32xf32, #tpu.memory_space<vmem>>, vector<1x32xf32>
      %15 = vector.broadcast %14 : vector<1x32xf32> to vector<16x32xf32>
      %16 = arith.addf %13, %15 : vector<16x32xf32>
      %17 = arith.truncf %16 : vector<16x32xf32> to vector<16x32xbf16>
      %c0_14 = arith.constant 0 : index
      %c0_15 = arith.constant 0 : index
      %18 = vector.load %arg6[%c0_14, %c0_15] : memref<16x32xbf16, #tpu.memory_space<vmem>>, vector<16x32xbf16>
      tpu.vector_store %arg6[%c0_14, %c0_15], %17 {strides = array<i32>} : memref<16x32xbf16, #tpu.memory_space<vmem>>, vector<16x32xbf16>,
    } else {
    }
    return
  }
  func.func @transform_0(%arg0: i32, %arg1: i32, %arg2: i32) -> (i32, i32) {
    %c0_i32 = arith.constant 0 : i32
    return %arg0, %arg2 : i32, i32
  }
  func.func @transform_1(%arg0: i32, %arg1: i32, %arg2: i32) -> (i32, i32) {
    %c0_i32 = arith.constant 0 : i32
    return %arg2, %arg1 : i32, i32
  }
  func.func @transform_2(%arg0: i32, %arg1: i32, %arg2: i32) -> (i32, i32) {
    %c0_i32 = arith.constant 0 : i32
    %c0_i32_0 = arith.constant 0 : i32
    return %c0_i32, %arg1 : i32, i32
  }
  func.func @transform_3(%arg0: i32, %arg1: i32, %arg2: i32) -> (i32, i32) {
    %c0_i32 = arith.constant 0 : i32
    return %arg0, %arg1 : i32, i32
  }
}

module attributes {stable_mosaic.version = 11 : i64} {
  func.func @_mha_headloop_kernel(%arg0: i32, %arg1: i32, %arg2: i32, %arg3: memref<1x8x32xbf16, #tpu.memory_space<vmem>>, %arg4: memref<1x8x32xbf16, #tpu.memory_space<vmem>>, %arg5: memref<1x8x32xbf16, #tpu.memory_space<vmem>>, %arg6: memref<1x8x8xi8, #tpu.memory_space<vmem>>, %arg7: memref<1x8x32xbf16, #tpu.memory_space<vmem>>, %arg8: memref<4x8x1xf32, #tpu.memory_space<vmem>>, %arg9: memref<4x8x1xf32, #tpu.memory_space<vmem>>, %arg10: memref<4x8x8xf32, #tpu.memory_space<vmem>>) attributes {dimension_semantics = [#tpu.dimension_semantics<parallel>, #tpu.dimension_semantics<parallel>, #tpu.dimension_semantics<arbitrary>], iteration_bounds = array<i64: 2, 1, 1>, scalar_prefetch = 0 : i64, scratch_operands = 3 : i64, tpu.core_type = #tpu.core_type<tc>, window_params = [{transform_indices = @transform_0, window_bounds = array<i64: 1, 8, 32>}, {transform_indices = @transform_1, window_bounds = array<i64: 1, 8, 32>}, {transform_indices = @transform_2, window_bounds = array<i64: 1, 8, 32>}, {transform_indices = @transform_3, window_bounds = array<i64: 1, 8, 8>}, {transform_indices = @transform_4, window_bounds = array<i64: 1, 8, 32>}]} {
    %c0_i32 = arith.constant 0 : i32
    %0 = arith.cmpi eq, %arg2, %c0_i32 : i32
    %1 = arith.extui %0 : i1 to i32
    %c0_i32_0 = arith.constant 0 : i32
    %2 = arith.cmpi ne, %1, %c0_i32_0 : i32
    scf.if %2 {
      %cst_103 = arith.constant -1.000000e+30 : f32
      %169 = vector.broadcast %cst_103 : f32 to vector<4x8x1xf32>
      %c0_104 = arith.constant 0 : index
      %c0_105 = arith.constant 0 : index
      %c0_106 = arith.constant 0 : index
      %170 = vector.load %arg8[%c0_104, %c0_105, %c0_106] : memref<4x8x1xf32, #tpu.memory_space<vmem>>, vector<4x8x1xf32>
      tpu.vector_store %arg8[%c0_104, %c0_105, %c0_106], %169 {strides = array<i32>} : memref<4x8x1xf32, #tpu.memory_space<vmem>>, vector<4x8x1xf32>,
      %cst_107 = arith.constant 0.000000e+00 : f32
      %171 = vector.broadcast %cst_107 : f32 to vector<4x8x1xf32>
      %c0_108 = arith.constant 0 : index
      %c0_109 = arith.constant 0 : index
      %c0_110 = arith.constant 0 : index
      %172 = vector.load %arg9[%c0_108, %c0_109, %c0_110] : memref<4x8x1xf32, #tpu.memory_space<vmem>>, vector<4x8x1xf32>
      tpu.vector_store %arg9[%c0_108, %c0_109, %c0_110], %171 {strides = array<i32>} : memref<4x8x1xf32, #tpu.memory_space<vmem>>, vector<4x8x1xf32>,
      %cst_111 = arith.constant 0.000000e+00 : f32
      %173 = vector.broadcast %cst_111 : f32 to vector<4x8x8xf32>
      %c0_112 = arith.constant 0 : index
      %c0_113 = arith.constant 0 : index
      %c0_114 = arith.constant 0 : index
      %174 = vector.load %arg10[%c0_112, %c0_113, %c0_114] : memref<4x8x8xf32, #tpu.memory_space<vmem>>, vector<4x8x8xf32>
      tpu.vector_store %arg10[%c0_112, %c0_113, %c0_114], %173 {strides = array<i32>} : memref<4x8x8xf32, #tpu.memory_space<vmem>>, vector<4x8x8xf32>,
    } else {
    }
    %c0 = arith.constant 0 : index
    %c0_1 = arith.constant 0 : index
    %c0_2 = arith.constant 0 : index
    %3 = vector.load %arg3[%c0, %c0_1, %c0_2] : memref<1x8x32xbf16, #tpu.memory_space<vmem>>, vector<1x8x32xbf16>
    %4 = vector.shape_cast %3 : vector<1x8x32xbf16> to vector<8x32xbf16>
    %c0_3 = arith.constant 0 : index
    %c0_4 = arith.constant 0 : index
    %c0_5 = arith.constant 0 : index
    %5 = vector.load %arg4[%c0_3, %c0_4, %c0_5] : memref<1x8x32xbf16, #tpu.memory_space<vmem>>, vector<1x8x32xbf16>
    %6 = vector.shape_cast %5 : vector<1x8x32xbf16> to vector<8x32xbf16>
    %c0_6 = arith.constant 0 : index
    %c0_7 = arith.constant 0 : index
    %c0_8 = arith.constant 0 : index
    %7 = vector.load %arg5[%c0_6, %c0_7, %c0_8] : memref<1x8x32xbf16, #tpu.memory_space<vmem>>, vector<1x8x32xbf16>
    %8 = vector.shape_cast %7 : vector<1x8x32xbf16> to vector<8x32xbf16>
    %c0_9 = arith.constant 0 : index
    %c0_10 = arith.constant 0 : index
    %c0_11 = arith.constant 0 : index
    %9 = vector.load %arg6[%c0_9, %c0_10, %c0_11] : memref<1x8x8xi8, #tpu.memory_space<vmem>>, vector<1x8x8xi8>
    %10 = vector.shape_cast %9 : vector<1x8x8xi8> to vector<8x8xi8>
    %11 = arith.extsi %10 : vector<8x8xi8> to vector<8x8xi32>
    %c0_i32_12 = arith.constant 0 : i32
    %12 = vector.broadcast %c0_i32_12 : i32 to vector<8x8xi32>
    %13 = arith.cmpi eq, %11, %12 : vector<8x8xi32>
    %14 = vector.extract_strided_slice %4 {offsets = [0, 0], sizes = [8, 8], strides = [1, 1]} : vector<8x32xbf16> to vector<8x8xbf16>
    %15 = vector.extract_strided_slice %6 {offsets = [0, 0], sizes = [8, 8], strides = [1, 1]} : vector<8x32xbf16> to vector<8x8xbf16>
    %16 = vector.extract_strided_slice %8 {offsets = [0, 0], sizes = [8, 8], strides = [1, 1]} : vector<8x32xbf16> to vector<8x8xbf16>
    %cst = arith.constant dense<0.000000e+00> : vector<8x8xf32>
    %17 = tpu.matmul %14, %15, %cst {dimension_numbers = #tpu.dot_dimension_numbers<[1], [1], [0], [0], [0, 0, 1, 0], [], []>} : vector<8x8xbf16>, vector<8x8xbf16>, vector<8x8xf32> -> vector<8x8xf32>
    %cst_13 = arith.constant -1.000000e+09 : f32
    %18 = vector.broadcast %cst_13 : f32 to vector<8x8xf32>
    %19 = arith.select %13, %18, %17 : vector<8x8xi1>, vector<8x8xf32>
    %c0_14 = arith.constant 0 : index
    %c0_15 = arith.constant 0 : index
    %c0_16 = arith.constant 0 : index
    %20 = vector.load %arg8[%c0_14, %c0_15, %c0_16] : memref<4x8x1xf32, #tpu.memory_space<vmem>>, vector<1x8x1xf32>
    %21 = vector.shape_cast %20 : vector<1x8x1xf32> to vector<8x1xf32>
    %cst_17 = arith.constant dense<0xFF800000> : vector<8xf32>
    %22 = vector.multi_reduction <maximumf>, %19, %cst_17 [1] : vector<8x8xf32> to vector<8xf32>
    %23 = vector.shape_cast %22 : vector<8xf32> to vector<8x1xf32>
    %24 = arith.maximumf %21, %23 : vector<8x1xf32>
    %25 = arith.subf %21, %24 : vector<8x1xf32>
    %26 = math.exp %25 : vector<8x1xf32>
    %27 = vector.broadcast %24 : vector<8x1xf32> to vector<8x8xf32>
    %28 = arith.subf %19, %27 : vector<8x8xf32>
    %29 = math.exp %28 : vector<8x8xf32>
    %c0_18 = arith.constant 0 : index
    %c0_19 = arith.constant 0 : index
    %c0_20 = arith.constant 0 : index
    %30 = vector.load %arg9[%c0_18, %c0_19, %c0_20] : memref<4x8x1xf32, #tpu.memory_space<vmem>>, vector<1x8x1xf32>
    %31 = vector.shape_cast %30 : vector<1x8x1xf32> to vector<8x1xf32>
    %32 = arith.mulf %26, %31 : vector<8x1xf32>
    %cst_21 = arith.constant dense<0.000000e+00> : vector<8xf32>
    %33 = vector.multi_reduction <add>, %29, %cst_21 [1] : vector<8x8xf32> to vector<8xf32>
    %34 = vector.shape_cast %33 : vector<8xf32> to vector<8x1xf32>
    %35 = arith.addf %32, %34 : vector<8x1xf32>
    %c0_22 = arith.constant 0 : index
    %c0_23 = arith.constant 0 : index
    %c0_24 = arith.constant 0 : index
    %36 = vector.load %arg9[%c0_22, %c0_23, %c0_24] : memref<4x8x1xf32, #tpu.memory_space<vmem>>, vector<1x8x1xf32>
    %37 = vector.shape_cast %36 : vector<1x8x1xf32> to vector<8x1xf32>
    %38 = vector.shape_cast %35 : vector<8x1xf32> to vector<1x8x1xf32>
    tpu.vector_store %arg9[%c0_22, %c0_23, %c0_24], %38 {strides = array<i32>} : memref<4x8x1xf32, #tpu.memory_space<vmem>>, vector<1x8x1xf32>,
    %c0_25 = arith.constant 0 : index
    %c0_26 = arith.constant 0 : index
    %c0_27 = arith.constant 0 : index
    %39 = vector.load %arg10[%c0_25, %c0_26, %c0_27] : memref<4x8x8xf32, #tpu.memory_space<vmem>>, vector<1x8x8xf32>
    %40 = vector.shape_cast %39 : vector<1x8x8xf32> to vector<8x8xf32>
    %41 = vector.broadcast %26 : vector<8x1xf32> to vector<8x8xf32>
    %42 = arith.mulf %41, %40 : vector<8x8xf32>
    %43 = arith.truncf %29 : vector<8x8xf32> to vector<8x8xbf16>
    %cst_28 = arith.constant dense<0.000000e+00> : vector<8x8xf32>
    %44 = tpu.matmul %43, %16, %cst_28 {dimension_numbers = #tpu.dot_dimension_numbers<[1], [0], [0], [1], [0, 0, 1, 1], [], []>} : vector<8x8xbf16>, vector<8x8xbf16>, vector<8x8xf32> -> vector<8x8xf32>
    %45 = arith.addf %42, %44 : vector<8x8xf32>
    %c0_29 = arith.constant 0 : index
    %c0_30 = arith.constant 0 : index
    %c0_31 = arith.constant 0 : index
    %46 = vector.load %arg10[%c0_29, %c0_30, %c0_31] : memref<4x8x8xf32, #tpu.memory_space<vmem>>, vector<1x8x8xf32>
    %47 = vector.shape_cast %46 : vector<1x8x8xf32> to vector<8x8xf32>
    %48 = vector.shape_cast %45 : vector<8x8xf32> to vector<1x8x8xf32>
    tpu.vector_store %arg10[%c0_29, %c0_30, %c0_31], %48 {strides = array<i32>} : memref<4x8x8xf32, #tpu.memory_space<vmem>>, vector<1x8x8xf32>,
    %c0_32 = arith.constant 0 : index
    %c0_33 = arith.constant 0 : index
    %c0_34 = arith.constant 0 : index
    %49 = vector.load %arg8[%c0_32, %c0_33, %c0_34] : memref<4x8x1xf32, #tpu.memory_space<vmem>>, vector<1x8x1xf32>
    %50 = vector.shape_cast %49 : vector<1x8x1xf32> to vector<8x1xf32>
    %51 = vector.shape_cast %24 : vector<8x1xf32> to vector<1x8x1xf32>
    tpu.vector_store %arg8[%c0_32, %c0_33, %c0_34], %51 {strides = array<i32>} : memref<4x8x1xf32, #tpu.memory_space<vmem>>, vector<1x8x1xf32>,
    %52 = vector.extract_strided_slice %4 {offsets = [0, 8], sizes = [8, 8], strides = [1, 1]} : vector<8x32xbf16> to vector<8x8xbf16>
    %53 = vector.extract_strided_slice %6 {offsets = [0, 8], sizes = [8, 8], strides = [1, 1]} : vector<8x32xbf16> to vector<8x8xbf16>
    %54 = vector.extract_strided_slice %8 {offsets = [0, 8], sizes = [8, 8], strides = [1, 1]} : vector<8x32xbf16> to vector<8x8xbf16>
    %cst_35 = arith.constant dense<0.000000e+00> : vector<8x8xf32>
    %55 = tpu.matmul %52, %53, %cst_35 {dimension_numbers = #tpu.dot_dimension_numbers<[1], [1], [0], [0], [0, 0, 1, 0], [], []>} : vector<8x8xbf16>, vector<8x8xbf16>, vector<8x8xf32> -> vector<8x8xf32>
    %cst_36 = arith.constant -1.000000e+09 : f32
    %56 = vector.broadcast %cst_36 : f32 to vector<8x8xf32>
    %57 = arith.select %13, %56, %55 : vector<8x8xi1>, vector<8x8xf32>
    %c1 = arith.constant 1 : index
    %c0_37 = arith.constant 0 : index
    %c0_38 = arith.constant 0 : index
    %58 = vector.load %arg8[%c1, %c0_37, %c0_38] : memref<4x8x1xf32, #tpu.memory_space<vmem>>, vector<1x8x1xf32>
    %59 = vector.shape_cast %58 : vector<1x8x1xf32> to vector<8x1xf32>
    %cst_39 = arith.constant dense<0xFF800000> : vector<8xf32>
    %60 = vector.multi_reduction <maximumf>, %57, %cst_39 [1] : vector<8x8xf32> to vector<8xf32>
    %61 = vector.shape_cast %60 : vector<8xf32> to vector<8x1xf32>
    %62 = arith.maximumf %59, %61 : vector<8x1xf32>
    %63 = arith.subf %59, %62 : vector<8x1xf32>
    %64 = math.exp %63 : vector<8x1xf32>
    %65 = vector.broadcast %62 : vector<8x1xf32> to vector<8x8xf32>
    %66 = arith.subf %57, %65 : vector<8x8xf32>
    %67 = math.exp %66 : vector<8x8xf32>
    %c1_40 = arith.constant 1 : index
    %c0_41 = arith.constant 0 : index
    %c0_42 = arith.constant 0 : index
    %68 = vector.load %arg9[%c1_40, %c0_41, %c0_42] : memref<4x8x1xf32, #tpu.memory_space<vmem>>, vector<1x8x1xf32>
    %69 = vector.shape_cast %68 : vector<1x8x1xf32> to vector<8x1xf32>
    %70 = arith.mulf %64, %69 : vector<8x1xf32>
    %cst_43 = arith.constant dense<0.000000e+00> : vector<8xf32>
    %71 = vector.multi_reduction <add>, %67, %cst_43 [1] : vector<8x8xf32> to vector<8xf32>
    %72 = vector.shape_cast %71 : vector<8xf32> to vector<8x1xf32>
    %73 = arith.addf %70, %72 : vector<8x1xf32>
    %c1_44 = arith.constant 1 : index
    %c0_45 = arith.constant 0 : index
    %c0_46 = arith.constant 0 : index
    %74 = vector.load %arg9[%c1_44, %c0_45, %c0_46] : memref<4x8x1xf32, #tpu.memory_space<vmem>>, vector<1x8x1xf32>
    %75 = vector.shape_cast %74 : vector<1x8x1xf32> to vector<8x1xf32>
    %76 = vector.shape_cast %73 : vector<8x1xf32> to vector<1x8x1xf32>
    tpu.vector_store %arg9[%c1_44, %c0_45, %c0_46], %76 {strides = array<i32>} : memref<4x8x1xf32, #tpu.memory_space<vmem>>, vector<1x8x1xf32>,
    %c1_47 = arith.constant 1 : index
    %c0_48 = arith.constant 0 : index
    %c0_49 = arith.constant 0 : index
    %77 = vector.load %arg10[%c1_47, %c0_48, %c0_49] : memref<4x8x8xf32, #tpu.memory_space<vmem>>, vector<1x8x8xf32>
    %78 = vector.shape_cast %77 : vector<1x8x8xf32> to vector<8x8xf32>
    %79 = vector.broadcast %64 : vector<8x1xf32> to vector<8x8xf32>
    %80 = arith.mulf %79, %78 : vector<8x8xf32>
    %81 = arith.truncf %67 : vector<8x8xf32> to vector<8x8xbf16>
    %cst_50 = arith.constant dense<0.000000e+00> : vector<8x8xf32>
    %82 = tpu.matmul %81, %54, %cst_50 {dimension_numbers = #tpu.dot_dimension_numbers<[1], [0], [0], [1], [0, 0, 1, 1], [], []>} : vector<8x8xbf16>, vector<8x8xbf16>, vector<8x8xf32> -> vector<8x8xf32>
    %83 = arith.addf %80, %82 : vector<8x8xf32>
    %c1_51 = arith.constant 1 : index
    %c0_52 = arith.constant 0 : index
    %c0_53 = arith.constant 0 : index
    %84 = vector.load %arg10[%c1_51, %c0_52, %c0_53] : memref<4x8x8xf32, #tpu.memory_space<vmem>>, vector<1x8x8xf32>
    %85 = vector.shape_cast %84 : vector<1x8x8xf32> to vector<8x8xf32>
    %86 = vector.shape_cast %83 : vector<8x8xf32> to vector<1x8x8xf32>
    tpu.vector_store %arg10[%c1_51, %c0_52, %c0_53], %86 {strides = array<i32>} : memref<4x8x8xf32, #tpu.memory_space<vmem>>, vector<1x8x8xf32>,
    %c1_54 = arith.constant 1 : index
    %c0_55 = arith.constant 0 : index
    %c0_56 = arith.constant 0 : index
    %87 = vector.load %arg8[%c1_54, %c0_55, %c0_56] : memref<4x8x1xf32, #tpu.memory_space<vmem>>, vector<1x8x1xf32>
    %88 = vector.shape_cast %87 : vector<1x8x1xf32> to vector<8x1xf32>
    %89 = vector.shape_cast %62 : vector<8x1xf32> to vector<1x8x1xf32>
    tpu.vector_store %arg8[%c1_54, %c0_55, %c0_56], %89 {strides = array<i32>} : memref<4x8x1xf32, #tpu.memory_space<vmem>>, vector<1x8x1xf32>,
    %90 = vector.extract_strided_slice %4 {offsets = [0, 16], sizes = [8, 8], strides = [1, 1]} : vector<8x32xbf16> to vector<8x8xbf16>
    %91 = vector.extract_strided_slice %6 {offsets = [0, 16], sizes = [8, 8], strides = [1, 1]} : vector<8x32xbf16> to vector<8x8xbf16>
    %92 = vector.extract_strided_slice %8 {offsets = [0, 16], sizes = [8, 8], strides = [1, 1]} : vector<8x32xbf16> to vector<8x8xbf16>
    %cst_57 = arith.constant dense<0.000000e+00> : vector<8x8xf32>
    %93 = tpu.matmul %90, %91, %cst_57 {dimension_numbers = #tpu.dot_dimension_numbers<[1], [1], [0], [0], [0, 0, 1, 0], [], []>} : vector<8x8xbf16>, vector<8x8xbf16>, vector<8x8xf32> -> vector<8x8xf32>
    %cst_58 = arith.constant -1.000000e+09 : f32
    %94 = vector.broadcast %cst_58 : f32 to vector<8x8xf32>
    %95 = arith.select %13, %94, %93 : vector<8x8xi1>, vector<8x8xf32>
    %c2 = arith.constant 2 : index
    %c0_59 = arith.constant 0 : index
    %c0_60 = arith.constant 0 : index
    %96 = vector.load %arg8[%c2, %c0_59, %c0_60] : memref<4x8x1xf32, #tpu.memory_space<vmem>>, vector<1x8x1xf32>
    %97 = vector.shape_cast %96 : vector<1x8x1xf32> to vector<8x1xf32>
    %cst_61 = arith.constant dense<0xFF800000> : vector<8xf32>
    %98 = vector.multi_reduction <maximumf>, %95, %cst_61 [1] : vector<8x8xf32> to vector<8xf32>
    %99 = vector.shape_cast %98 : vector<8xf32> to vector<8x1xf32>
    %100 = arith.maximumf %97, %99 : vector<8x1xf32>
    %101 = arith.subf %97, %100 : vector<8x1xf32>
    %102 = math.exp %101 : vector<8x1xf32>
    %103 = vector.broadcast %100 : vector<8x1xf32> to vector<8x8xf32>
    %104 = arith.subf %95, %103 : vector<8x8xf32>
    %105 = math.exp %104 : vector<8x8xf32>
    %c2_62 = arith.constant 2 : index
    %c0_63 = arith.constant 0 : index
    %c0_64 = arith.constant 0 : index
    %106 = vector.load %arg9[%c2_62, %c0_63, %c0_64] : memref<4x8x1xf32, #tpu.memory_space<vmem>>, vector<1x8x1xf32>
    %107 = vector.shape_cast %106 : vector<1x8x1xf32> to vector<8x1xf32>
    %108 = arith.mulf %102, %107 : vector<8x1xf32>
    %cst_65 = arith.constant dense<0.000000e+00> : vector<8xf32>
    %109 = vector.multi_reduction <add>, %105, %cst_65 [1] : vector<8x8xf32> to vector<8xf32>
    %110 = vector.shape_cast %109 : vector<8xf32> to vector<8x1xf32>
    %111 = arith.addf %108, %110 : vector<8x1xf32>
    %c2_66 = arith.constant 2 : index
    %c0_67 = arith.constant 0 : index
    %c0_68 = arith.constant 0 : index
    %112 = vector.load %arg9[%c2_66, %c0_67, %c0_68] : memref<4x8x1xf32, #tpu.memory_space<vmem>>, vector<1x8x1xf32>
    %113 = vector.shape_cast %112 : vector<1x8x1xf32> to vector<8x1xf32>
    %114 = vector.shape_cast %111 : vector<8x1xf32> to vector<1x8x1xf32>
    tpu.vector_store %arg9[%c2_66, %c0_67, %c0_68], %114 {strides = array<i32>} : memref<4x8x1xf32, #tpu.memory_space<vmem>>, vector<1x8x1xf32>,
    %c2_69 = arith.constant 2 : index
    %c0_70 = arith.constant 0 : index
    %c0_71 = arith.constant 0 : index
    %115 = vector.load %arg10[%c2_69, %c0_70, %c0_71] : memref<4x8x8xf32, #tpu.memory_space<vmem>>, vector<1x8x8xf32>
    %116 = vector.shape_cast %115 : vector<1x8x8xf32> to vector<8x8xf32>
    %117 = vector.broadcast %102 : vector<8x1xf32> to vector<8x8xf32>
    %118 = arith.mulf %117, %116 : vector<8x8xf32>
    %119 = arith.truncf %105 : vector<8x8xf32> to vector<8x8xbf16>
    %cst_72 = arith.constant dense<0.000000e+00> : vector<8x8xf32>
    %120 = tpu.matmul %119, %92, %cst_72 {dimension_numbers = #tpu.dot_dimension_numbers<[1], [0], [0], [1], [0, 0, 1, 1], [], []>} : vector<8x8xbf16>, vector<8x8xbf16>, vector<8x8xf32> -> vector<8x8xf32>
    %121 = arith.addf %118, %120 : vector<8x8xf32>
    %c2_73 = arith.constant 2 : index
    %c0_74 = arith.constant 0 : index
    %c0_75 = arith.constant 0 : index
    %122 = vector.load %arg10[%c2_73, %c0_74, %c0_75] : memref<4x8x8xf32, #tpu.memory_space<vmem>>, vector<1x8x8xf32>
    %123 = vector.shape_cast %122 : vector<1x8x8xf32> to vector<8x8xf32>
    %124 = vector.shape_cast %121 : vector<8x8xf32> to vector<1x8x8xf32>
    tpu.vector_store %arg10[%c2_73, %c0_74, %c0_75], %124 {strides = array<i32>} : memref<4x8x8xf32, #tpu.memory_space<vmem>>, vector<1x8x8xf32>,
    %c2_76 = arith.constant 2 : index
    %c0_77 = arith.constant 0 : index
    %c0_78 = arith.constant 0 : index
    %125 = vector.load %arg8[%c2_76, %c0_77, %c0_78] : memref<4x8x1xf32, #tpu.memory_space<vmem>>, vector<1x8x1xf32>
    %126 = vector.shape_cast %125 : vector<1x8x1xf32> to vector<8x1xf32>
    %127 = vector.shape_cast %100 : vector<8x1xf32> to vector<1x8x1xf32>
    tpu.vector_store %arg8[%c2_76, %c0_77, %c0_78], %127 {strides = array<i32>} : memref<4x8x1xf32, #tpu.memory_space<vmem>>, vector<1x8x1xf32>,
    %128 = vector.extract_strided_slice %4 {offsets = [0, 24], sizes = [8, 8], strides = [1, 1]} : vector<8x32xbf16> to vector<8x8xbf16>
    %129 = vector.extract_strided_slice %6 {offsets = [0, 24], sizes = [8, 8], strides = [1, 1]} : vector<8x32xbf16> to vector<8x8xbf16>
    %130 = vector.extract_strided_slice %8 {offsets = [0, 24], sizes = [8, 8], strides = [1, 1]} : vector<8x32xbf16> to vector<8x8xbf16>
    %cst_79 = arith.constant dense<0.000000e+00> : vector<8x8xf32>
    %131 = tpu.matmul %128, %129, %cst_79 {dimension_numbers = #tpu.dot_dimension_numbers<[1], [1], [0], [0], [0, 0, 1, 0], [], []>} : vector<8x8xbf16>, vector<8x8xbf16>, vector<8x8xf32> -> vector<8x8xf32>
    %cst_80 = arith.constant -1.000000e+09 : f32
    %132 = vector.broadcast %cst_80 : f32 to vector<8x8xf32>
    %133 = arith.select %13, %132, %131 : vector<8x8xi1>, vector<8x8xf32>
    %c3 = arith.constant 3 : index
    %c0_81 = arith.constant 0 : index
    %c0_82 = arith.constant 0 : index
    %134 = vector.load %arg8[%c3, %c0_81, %c0_82] : memref<4x8x1xf32, #tpu.memory_space<vmem>>, vector<1x8x1xf32>
    %135 = vector.shape_cast %134 : vector<1x8x1xf32> to vector<8x1xf32>
    %cst_83 = arith.constant dense<0xFF800000> : vector<8xf32>
    %136 = vector.multi_reduction <maximumf>, %133, %cst_83 [1] : vector<8x8xf32> to vector<8xf32>
    %137 = vector.shape_cast %136 : vector<8xf32> to vector<8x1xf32>
    %138 = arith.maximumf %135, %137 : vector<8x1xf32>
    %139 = arith.subf %135, %138 : vector<8x1xf32>
    %140 = math.exp %139 : vector<8x1xf32>
    %141 = vector.broadcast %138 : vector<8x1xf32> to vector<8x8xf32>
    %142 = arith.subf %133, %141 : vector<8x8xf32>
    %143 = math.exp %142 : vector<8x8xf32>
    %c3_84 = arith.constant 3 : index
    %c0_85 = arith.constant 0 : index
    %c0_86 = arith.constant 0 : index
    %144 = vector.load %arg9[%c3_84, %c0_85, %c0_86] : memref<4x8x1xf32, #tpu.memory_space<vmem>>, vector<1x8x1xf32>
    %145 = vector.shape_cast %144 : vector<1x8x1xf32> to vector<8x1xf32>
    %146 = arith.mulf %140, %145 : vector<8x1xf32>
    %cst_87 = arith.constant dense<0.000000e+00> : vector<8xf32>
    %147 = vector.multi_reduction <add>, %143, %cst_87 [1] : vector<8x8xf32> to vector<8xf32>
    %148 = vector.shape_cast %147 : vector<8xf32> to vector<8x1xf32>
    %149 = arith.addf %146, %148 : vector<8x1xf32>
    %c3_88 = arith.constant 3 : index
    %c0_89 = arith.constant 0 : index
    %c0_90 = arith.constant 0 : index
    %150 = vector.load %arg9[%c3_88, %c0_89, %c0_90] : memref<4x8x1xf32, #tpu.memory_space<vmem>>, vector<1x8x1xf32>
    %151 = vector.shape_cast %150 : vector<1x8x1xf32> to vector<8x1xf32>
    %152 = vector.shape_cast %149 : vector<8x1xf32> to vector<1x8x1xf32>
    tpu.vector_store %arg9[%c3_88, %c0_89, %c0_90], %152 {strides = array<i32>} : memref<4x8x1xf32, #tpu.memory_space<vmem>>, vector<1x8x1xf32>,
    %c3_91 = arith.constant 3 : index
    %c0_92 = arith.constant 0 : index
    %c0_93 = arith.constant 0 : index
    %153 = vector.load %arg10[%c3_91, %c0_92, %c0_93] : memref<4x8x8xf32, #tpu.memory_space<vmem>>, vector<1x8x8xf32>
    %154 = vector.shape_cast %153 : vector<1x8x8xf32> to vector<8x8xf32>
    %155 = vector.broadcast %140 : vector<8x1xf32> to vector<8x8xf32>
    %156 = arith.mulf %155, %154 : vector<8x8xf32>
    %157 = arith.truncf %143 : vector<8x8xf32> to vector<8x8xbf16>
    %cst_94 = arith.constant dense<0.000000e+00> : vector<8x8xf32>
    %158 = tpu.matmul %157, %130, %cst_94 {dimension_numbers = #tpu.dot_dimension_numbers<[1], [0], [0], [1], [0, 0, 1, 1], [], []>} : vector<8x8xbf16>, vector<8x8xbf16>, vector<8x8xf32> -> vector<8x8xf32>
    %159 = arith.addf %156, %158 : vector<8x8xf32>
    %c3_95 = arith.constant 3 : index
    %c0_96 = arith.constant 0 : index
    %c0_97 = arith.constant 0 : index
    %160 = vector.load %arg10[%c3_95, %c0_96, %c0_97] : memref<4x8x8xf32, #tpu.memory_space<vmem>>, vector<1x8x8xf32>
    %161 = vector.shape_cast %160 : vector<1x8x8xf32> to vector<8x8xf32>
    %162 = vector.shape_cast %159 : vector<8x8xf32> to vector<1x8x8xf32>
    tpu.vector_store %arg10[%c3_95, %c0_96, %c0_97], %162 {strides = array<i32>} : memref<4x8x8xf32, #tpu.memory_space<vmem>>, vector<1x8x8xf32>,
    %c3_98 = arith.constant 3 : index
    %c0_99 = arith.constant 0 : index
    %c0_100 = arith.constant 0 : index
    %163 = vector.load %arg8[%c3_98, %c0_99, %c0_100] : memref<4x8x1xf32, #tpu.memory_space<vmem>>, vector<1x8x1xf32>
    %164 = vector.shape_cast %163 : vector<1x8x1xf32> to vector<8x1xf32>
    %165 = vector.shape_cast %138 : vector<8x1xf32> to vector<1x8x1xf32>
    tpu.vector_store %arg8[%c3_98, %c0_99, %c0_100], %165 {strides = array<i32>} : memref<4x8x1xf32, #tpu.memory_space<vmem>>, vector<1x8x1xf32>,
    %c0_i32_101 = arith.constant 0 : i32
    %166 = arith.cmpi eq, %arg2, %c0_i32_101 : i32
    %167 = arith.extui %166 : i1 to i32
    %c0_i32_102 = arith.constant 0 : i32
    %168 = arith.cmpi ne, %167, %c0_i32_102 : i32
    scf.if %168 {
      %c0_103 = arith.constant 0 : index
      %c0_104 = arith.constant 0 : index
      %c0_105 = arith.constant 0 : index
      %169 = vector.load %arg9[%c0_103, %c0_104, %c0_105] : memref<4x8x1xf32, #tpu.memory_space<vmem>>, vector<1x8x1xf32>
      %170 = vector.shape_cast %169 : vector<1x8x1xf32> to vector<8x1xf32>
      %171 = tpu.reciprocal %170 {approx = true} : vector<8x1xf32> -> vector<8x1xf32>
      %c0_106 = arith.constant 0 : index
      %c0_107 = arith.constant 0 : index
      %c0_108 = arith.constant 0 : index
      %172 = vector.load %arg10[%c0_106, %c0_107, %c0_108] : memref<4x8x8xf32, #tpu.memory_space<vmem>>, vector<1x8x8xf32>
      %173 = vector.shape_cast %172 : vector<1x8x8xf32> to vector<8x8xf32>
      %174 = vector.broadcast %171 : vector<8x1xf32> to vector<8x8xf32>
      %175 = arith.mulf %173, %174 : vector<8x8xf32>
      %c1_109 = arith.constant 1 : index
      %c0_110 = arith.constant 0 : index
      %c0_111 = arith.constant 0 : index
      %176 = vector.load %arg9[%c1_109, %c0_110, %c0_111] : memref<4x8x1xf32, #tpu.memory_space<vmem>>, vector<1x8x1xf32>
      %177 = vector.shape_cast %176 : vector<1x8x1xf32> to vector<8x1xf32>
      %178 = tpu.reciprocal %177 {approx = true} : vector<8x1xf32> -> vector<8x1xf32>
      %c1_112 = arith.constant 1 : index
      %c0_113 = arith.constant 0 : index
      %c0_114 = arith.constant 0 : index
      %179 = vector.load %arg10[%c1_112, %c0_113, %c0_114] : memref<4x8x8xf32, #tpu.memory_space<vmem>>, vector<1x8x8xf32>
      %180 = vector.shape_cast %179 : vector<1x8x8xf32> to vector<8x8xf32>
      %181 = vector.broadcast %178 : vector<8x1xf32> to vector<8x8xf32>
      %182 = arith.mulf %180, %181 : vector<8x8xf32>
      %c2_115 = arith.constant 2 : index
      %c0_116 = arith.constant 0 : index
      %c0_117 = arith.constant 0 : index
      %183 = vector.load %arg9[%c2_115, %c0_116, %c0_117] : memref<4x8x1xf32, #tpu.memory_space<vmem>>, vector<1x8x1xf32>
      %184 = vector.shape_cast %183 : vector<1x8x1xf32> to vector<8x1xf32>
      %185 = tpu.reciprocal %184 {approx = true} : vector<8x1xf32> -> vector<8x1xf32>
      %c2_118 = arith.constant 2 : index
      %c0_119 = arith.constant 0 : index
      %c0_120 = arith.constant 0 : index
      %186 = vector.load %arg10[%c2_118, %c0_119, %c0_120] : memref<4x8x8xf32, #tpu.memory_space<vmem>>, vector<1x8x8xf32>
      %187 = vector.shape_cast %186 : vector<1x8x8xf32> to vector<8x8xf32>
      %188 = vector.broadcast %185 : vector<8x1xf32> to vector<8x8xf32>
      %189 = arith.mulf %187, %188 : vector<8x8xf32>
      %c3_121 = arith.constant 3 : index
      %c0_122 = arith.constant 0 : index
      %c0_123 = arith.constant 0 : index
      %190 = vector.load %arg9[%c3_121, %c0_122, %c0_123] : memref<4x8x1xf32, #tpu.memory_space<vmem>>, vector<1x8x1xf32>
      %191 = vector.shape_cast %190 : vector<1x8x1xf32> to vector<8x1xf32>
      %192 = tpu.reciprocal %191 {approx = true} : vector<8x1xf32> -> vector<8x1xf32>
      %c3_124 = arith.constant 3 : index
      %c0_125 = arith.constant 0 : index
      %c0_126 = arith.constant 0 : index
      %193 = vector.load %arg10[%c3_124, %c0_125, %c0_126] : memref<4x8x8xf32, #tpu.memory_space<vmem>>, vector<1x8x8xf32>
      %194 = vector.shape_cast %193 : vector<1x8x8xf32> to vector<8x8xf32>
      %195 = vector.broadcast %192 : vector<8x1xf32> to vector<8x8xf32>
      %196 = arith.mulf %194, %195 : vector<8x8xf32>
      %197 = tpu.concatenate %175, %182, %189, %196 in 1 : vector<8x8xf32>, vector<8x8xf32>, vector<8x8xf32>, vector<8x8xf32> -> vector<8x32xf32>
      %198 = arith.truncf %197 : vector<8x32xf32> to vector<8x32xbf16>
      %c0_127 = arith.constant 0 : index
      %c0_128 = arith.constant 0 : index
      %c0_129 = arith.constant 0 : index
      %199 = vector.load %arg7[%c0_127, %c0_128, %c0_129] : memref<1x8x32xbf16, #tpu.memory_space<vmem>>, vector<1x8x32xbf16>
      %200 = vector.shape_cast %199 : vector<1x8x32xbf16> to vector<8x32xbf16>
      %201 = vector.shape_cast %198 : vector<8x32xbf16> to vector<1x8x32xbf16>
      tpu.vector_store %arg7[%c0_127, %c0_128, %c0_129], %201 {strides = array<i32>} : memref<1x8x32xbf16, #tpu.memory_space<vmem>>, vector<1x8x32xbf16>,
    } else {
    }
    return
  }
  func.func @transform_0(%arg0: i32, %arg1: i32, %arg2: i32) -> (i32, i32, i32) {
    %c0_i32 = arith.constant 0 : i32
    %c0_i32_0 = arith.constant 0 : i32
    return %arg0, %arg1, %c0_i32 : i32, i32, i32
  }
  func.func @transform_1(%arg0: i32, %arg1: i32, %arg2: i32) -> (i32, i32, i32) {
    %c0_i32 = arith.constant 0 : i32
    %c0_i32_0 = arith.constant 0 : i32
    return %arg0, %arg2, %c0_i32 : i32, i32, i32
  }
  func.func @transform_2(%arg0: i32, %arg1: i32, %arg2: i32) -> (i32, i32, i32) {
    %c0_i32 = arith.constant 0 : i32
    %c0_i32_0 = arith.constant 0 : i32
    return %arg0, %arg2, %c0_i32 : i32, i32, i32
  }
  func.func @transform_3(%arg0: i32, %arg1: i32, %arg2: i32) -> (i32, i32, i32) {
    %c0_i32 = arith.constant 0 : i32
    return %arg0, %arg1, %arg2 : i32, i32, i32
  }
  func.func @transform_4(%arg0: i32, %arg1: i32, %arg2: i32) -> (i32, i32, i32) {
    %c0_i32 = arith.constant 0 : i32
    %c0_i32_0 = arith.constant 0 : i32
    return %arg0, %arg1, %c0_i32 : i32, i32, i32
  }
}

</mosaic_0001>

<bundles_post_ra>
// kernel: multi_headed_attention.9
= control target key start
LH: loop header
LB: loop body
LE: loop exit
PB: predicated region body
PF: predicated region fallthrough
CT: control target
= control target key end

     0   :  { %v177_v1 = vmov 0.0   ;;  %vm178_vm0 = vmmov 0   ;;  %vm20_vm1 = vcmask 261120   ;;  %s233_s0 = inlined_call_operand.vmem [shape: bf16[16,32], index: 0, kind: input, shape index: {}]   ;;  %s234_s1 = inlined_call_operand.vmem [shape: bf16[32,32], index: 1, kind: input, shape index: {}]   ;;  %s235_s2 = inlined_call_operand.vmem [shape: f32[1,32], index: 2, kind: input, shape index: {}]   ;;  %s236_s3 = inlined_call_operand.hbm [shape: f32[16,32], index: 3, kind: output, shape index: {}]  }
   0x1   :  { %v150_v0 = vld [vmem:[%s234_s1] sm:$0xff]   ;;  %137 = vmatprep.subr.bf16.mxu0 %v177_v1  ;;  %v151_v2 = vld [vmem:[%s234_s1 + $0x8] sm:$0xff]   ;;  %141 = vmatprep.mubr.msk.bf16.mxu0 %vm178_vm0, %v177_v1  ;;  %21 = vst.msk [vmem:[#allocation2] sm:$0xff] %vm20_vm1, %v177_v1  ;;  %22 = vst.msk [vmem:[#allocation2 + $0x8] sm:$0xff] %vm20_vm1, %v177_v1 }
   0x2   :  { %138 = vmatpush3.bf16.msra.mxu0 %v150_v0 }
   0x3   :  { %139 = vmatprep.subr.bf16.mxu0 %v177_v1 }
   0x4   :  { %8 = vsyncpa [#allocation4], 0  ;;  %v152_v3 = vld [vmem:[%s233_s0] sm:$0xff]   ;;  %s179_s0 = smov [#allocation3]  }
   0x5   :  { %v133_v12 = vld [vmem:[%s235_s2] ss:$0 sm:$0xff]  ;;  %s118_s19 = sshll.u32 %s179_s0, 4  ;;  %s119_s19 = int_to_ptr.vmem [resolvable:$true] %s118_s19 }
   0x6   :  { %140 = vmatpush3.bf16.msra.mxu0 %v151_v2  ;;  %s153_s20 = scalar_lea.vmem %s119_s19, 256  ;;  %p158_p1 = scmp.lt.s32.totalorder %s119_s19, %s119_s19 }
   0x7   :  { %p154_p0 = scmp.ne.s32.totalorder %s119_s19, %s153_s20  ;;  %p159_p2 = scmp.lt.s32.totalorder %s153_s20, %s153_s20 }
   0x8   :  { %v25_v4 = vld [vmem:[#allocation2] sm:$0xff]  ;;  %v26_v6 = vld [vmem:[#allocation2 + $0x8] sm:$0xff] }
   0x9   :  { %142 = vmatmul.mubr.msk.bf16.vlgmr.msra.gmra.mrb[0].mxu0 %vm20_vm1, %v152_v3  ;;  %p160_p3 = por %p159_p2, %p158_p1 }
   0xb   :  { %p161_p4 = pnand %p160_p3, %p154_p0 }
  0xdc   :  { %v86_v5 = vpop.f32.mrb[0].mxu0 }
  0xdd   :  { %v93_v7 = vadd.f32 %v86_v5, %v25_v4  ;;  %v143_v8 = vpop.f32.mrb[1].mxu0 }
  0xde   :  { %v89_v9 = vpop.f32.mrb[2].mxu0 }
  0xdf   :  { %95 = vst.msk [vmem:[#allocation2] sm:$0xff] %vm20_vm1, %v93_v7  ;;  %v94_v10 = vadd.f32 %v89_v9, %v26_v6  ;;  %v144_v11 = vpop.f32.mrb[3].mxu0 }
  0xe1   :  { %96 = vst.msk [vmem:[#allocation2 + $0x8] sm:$0xff] %vm20_vm1, %v94_v10 }
  0xe6   :  { %v100_v13 = vld [vmem:[#allocation2] sm:$0xff] }
  0xe7   :  { %v109_v14 = vadd.f32 %v133_v12, %v100_v13 }
  0xe8   :  { %v101_v15 = vld [vmem:[#allocation2 + $0x8] sm:$0xff] }
  0xe9   :  { %v110_v16 = vadd.f32 %v133_v12, %v101_v15  ;;  %111 = vst.msk [vmem:[#allocation3] sm:$0xff] %vm20_vm1, %v109_v14 }
  0xeb   :  { %112 = vst.msk [vmem:[#allocation3 + $0x8] sm:$0xff] %vm20_vm1, %v110_v16 }
  0xec   :  { %164 = shalt.err (!%p161_p4)
}
  0xed   :  { %s165_s22 = scalar_lea.hbm %s236_s3, 256 }
  0xee   :  { %p166_p5 = scmp.ne.s32.totalorder %s236_s3, %s165_s22  ;;  %p169_p6 = scmp.lt.u32.totalorder %s165_s22, %s236_s3 }
  0xf0   :  { %p171_p7 = pnand %p169_p6, %p166_p5 }
  0xf2   :  { %174 = shalt.err (!%p171_p7)
}
  0xf3   :  { %s180_s27 = smov 128   ;;  %s181_s28 = smov 8  }
  0xf4   :  { %124 = dma.vmem_to_hbm [thread:$0]  %s119_s19, 256, %s236_s3, [#allocation4], %s180_s27, %s180_s27, %s181_s28  }
  0xf5   :  { %175 = dma.done.wait [#allocation4], 256  }
  0xf6   :  { %176 = vsyncadd [#allocation4], 4294967040 }
  0xf7   :  { %128 = vsyncpa [#allocation4], 1 }

// kernel: multi_headed_attention.6
= control target key start
LH: loop header
LB: loop body
LE: loop exit
PB: predicated region body
PF: predicated region fallthrough
CT: control target
= control target key end

     0   :  { %vm19_vm0 = vcmask 261120   ;;  %v144_v0 = vmov 0.0   ;;  %vm145_vm1 = vmmov 0   ;;  %vm114_vm2 = vcmask 257024   ;;  %s192_s1 = inlined_call_operand.vmem [shape: bf16[32,32], index: 1, kind: input, shape index: {}]   ;;  %s193_s0 = inlined_call_operand.vmem [shape: f32[16,32], index: 0, kind: input, shape index: {}]   ;;  %s194_s2 = inlined_call_operand.vmem [shape: f32[1,32], index: 2, kind: input, shape index: {}]   ;;  %s195_s3 = inlined_call_operand.vmem [shape: bf16[16,32], index: 3, kind: output, shape index: {}]  }
   0x1   :  { %132 = vmatprep.subr.bf16.mxu0 %v144_v0  ;;  %v142_v1 = vld [vmem:[%s192_s1] sm:$0xff]   ;;  %136 = vmatprep.mubr.msk.bf16.mxu0 %vm145_vm1, %v144_v0  ;;  %20 = vst.msk [vmem:[#allocation2] sm:$0xff] %vm19_vm0, %v144_v0  ;;  %21 = vst.msk [vmem:[#allocation2 + $0x8] sm:$0xff] %vm19_vm0, %v144_v0  ;;  %v143_v2 = vld [vmem:[%s192_s1 + $0x8] sm:$0xff]  }
   0x2   :  { %133 = vmatpush3.bf16.msra.mxu0 %v142_v1  ;;  %v22_v3 = vld [vmem:[%s193_s0] sm:$0xff]  ;;  %v23_v4 = vld [vmem:[%s193_s0 + $0x8] sm:$0xff] }
   0x3   :  { %134 = vmatprep.subr.bf16.mxu0 %v144_v0  ;;  %v24_v5 = vpack.c.bf16 %v23_v4, %v22_v3  ;;  %v124_v14 = vld [vmem:[%s194_s2] ss:$0 sm:$0xff] }
   0x6   :  { %135 = vmatpush3.bf16.msra.mxu0 %v143_v2 }
   0x8   :  { %v25_v6 = vld [vmem:[#allocation2] sm:$0xff]  ;;  %v26_v8 = vld [vmem:[#allocation2 + $0x8] sm:$0xff] }
   0x9   :  { %137 = vmatmul.mubr.msk.bf16.vlgmr.msra.gmra.mrb[0].mxu0 %vm19_vm0, %v24_v5 }
  0xdc   :  { %v81_v7 = vpop.f32.mrb[0].mxu0 }
  0xdd   :  { %v88_v9 = vadd.f32 %v81_v7, %v25_v6  ;;  %v138_v10 = vpop.f32.mrb[1].mxu0 }
  0xde   :  { %v84_v11 = vpop.f32.mrb[2].mxu0 }
  0xdf   :  { %90 = vst.msk [vmem:[#allocation2] sm:$0xff] %vm19_vm0, %v88_v9  ;;  %v89_v12 = vadd.f32 %v84_v11, %v26_v8  ;;  %v139_v13 = vpop.f32.mrb[3].mxu0 }
  0xe1   :  { %91 = vst.msk [vmem:[#allocation2 + $0x8] sm:$0xff] %vm19_vm0, %v89_v12 }
  0xe6   :  { %v95_v15 = vld [vmem:[#allocation2] sm:$0xff] }
  0xe7   :  { %v104_v16 = vadd.f32 %v124_v14, %v95_v15 }
  0xe8   :  { %v96_v17 = vld [vmem:[#allocation2 + $0x8] sm:$0xff] }
  0xe9   :  { %v127_v18 = vpack.c.bf16 %v104_v16, %v104_v16  ;;  %v105_v19 = vadd.f32 %v124_v14, %v96_v17 }
  0xeb   :  { %115 = vst.msk [vmem:[%s195_s3] sm:$0xf] %vm114_vm2, %v127_v18  ;;  %v128_v20 = vpack.c.bf16 %v105_v19, %v105_v19 }
  0xed   :  { %116 = vst.msk [vmem:[%s195_s3 + $0x4] sm:$0xf] %vm114_vm2, %v128_v20 }

// kernel: multi_headed_attention.8
= control target key start
LH: loop header
LB: loop body
LE: loop exit
PB: predicated region body
PF: predicated region fallthrough
CT: control target
= control target key end

     0   :  { %s1290_s15 = smov 0   ;;  %s1292_s16 = smov 0   ;;  %s1469_s0 = inlined_call_operand.vmem [shape: bf16[2,8,32], index: 0, kind: input, shape index: {}]   ;;  %s1470_s1 = inlined_call_operand.vmem [shape: bf16[2,8,32], index: 1, kind: input, shape index: {}]   ;;  %s1471_s2 = inlined_call_operand.vmem [shape: bf16[2,8,32], index: 2, kind: input, shape index: {}]   ;;  %s1472_s3 = inlined_call_operand.vmem [shape: s8[2,8,8], index: 3, kind: input, shape index: {}]   ;;  %s1473_s4 = inlined_call_operand.vmem [shape: bf16[2,8,32], index: 4, kind: output, shape index: {}]  }
   0x1   :  { %s1294_s17 = smov 0  }
   0x2 LB: > { %s33_s18 = sadd.s32 1, %s1249_s16  ;;  %p1086_p0 = scmp.ge.s32.totalorder %s1253_s17, 1  ;;  %s1253_s17 = sphi %s1294_s17, %s14_s17   ;;  %s1249_s16 = sphi %s1292_s16, %s1477_s16   ;;  %s1245_s15 = sphi %s1290_s15, %s1476_s15  }
   0x3   : > { %p35_p1 = scmp.ge.s32.totalorder %s33_s18, 2  ;;  %p234_p2 = scmp.lt.s32.totalorder %s1253_s17, 3 }
   0x5   : > { %s1479_s18 = smov (%p35_p1, %s33_s18), 0  ;;  %p235_p3 = pnand %p1086_p0, %p234_p2 }
   0x6   : > { %p288_p4 = scmp.lt.s32.totalorder (!%p235_p3), %s1245_s15, 1  ;;  %vm340_vm0 = vcmask (!%p235_p3), 64512   ;;  %v1255_v0 = vmov (!%p235_p3), 0.0   ;;  %vm1256_vm1 = vmmov (!%p235_p3), 0   ;;  %vm331_vm2 = vcmask (!%p235_p3), 7168   ;;  %s1259_s30 = smov (!%p235_p3), 120  }
   0x7   : > { %238 = sbr.rel (%p235_p3) target bundleno = 1467 (0x5bb), region = 36  ;;  %1121 = vmatprep.subr.bf16.mxu0 (!%p235_p3), %v1255_v0  ;;  %341 = vst.msk [vmem:[#allocation4] sm:$0xff] (!%p235_p3), %vm340_vm0, %v1255_v0  ;;  %342 = vst.msk [vmem:[#allocation4 + $0x8] sm:$0xff] (!%p235_p3), %vm340_vm0, %v1255_v0  ;;  %1123 = vmatprep.mubr.msk.bf16.mxu0 (!%p235_p3), %vm1256_vm1, %v1255_v0  ;;  %v1257_v4 = vmov (!%p235_p3), -1e+30   ;;  %v1258_v14 = vmov (!%p235_p3), 0  }
   0x8   : > { %343 = vst.msk [vmem:[#allocation4 + $0x10] sm:$0xff] (!%p235_p3), %vm340_vm0, %v1255_v0  ;;  %344 = vst.msk [vmem:[#allocation4 + $0x18] sm:$0xff] (!%p235_p3), %vm340_vm0, %v1255_v0  ;;  %1127 = vmatprep.subr.bf16.mxu1 (!%p235_p3), %v1255_v0  ;;  %1129 = vmatprep.mubr.msk.bf16.mxu1 (!%p235_p3), %vm1256_vm1, %v1255_v0  ;;  %s1260_s5 = smov (!%p235_p3), 112   ;;  %s1261_s6 = smov (!%p235_p3), 104   ;;  %vm434_vm4 = vcmask (!%p235_p3), 1043456   ;;  %vm950_vm5 = vcmask (!%p235_p3), 130048  }
   0x9   : > { %332 = vst.msk [vmem:[#allocation2] sm:$0xff] (!%p235_p3), %vm331_vm2, %v1257_v4  ;;  %333 = vst.msk [vmem:[#allocation2 + $0x8] sm:$0xff] (!%p235_p3), %vm331_vm2, %v1257_v4  ;;  %1203 = vset.pattern.permute.xlu0 (!%p235_p3), %v1258_v14  ;;  %1204 = vset.pattern.permute.xlu1 (!%p235_p3), %v1258_v14  ;;  %s1262_s10 = smov (!%p235_p3), 8   ;;  %s1263_s11 = smov (!%p235_p3), 16   ;;  %vm952_vm6 = vcmask (!%p235_p3), 195584   ;;  %vm955_vm7 = vcmask (!%p235_p3), 257024  }
   0xa   : > { %334 = vst.msk [vmem:[#allocation2 + $0x10] sm:$0xff] (!%p235_p3), %vm331_vm2, %v1257_v4  ;;  %335 = vst.msk [vmem:[#allocation2 + $0x18] sm:$0xff] (!%p235_p3), %vm331_vm2, %v1257_v4  ;;  %s1264_s12 = smov (!%p235_p3), 24  }
   0xb   : > { %336 = vst.msk [vmem:[#allocation3] sm:$0xff] (!%p235_p3), %vm331_vm2, %v1255_v0  ;;  %337 = vst.msk [vmem:[#allocation3 + $0x8] sm:$0xff] (!%p235_p3), %vm331_vm2, %v1255_v0 }
   0xc   : > { %338 = vst.msk [vmem:[#allocation3 + $0x10] sm:$0xff] (!%p235_p3), %vm331_vm2, %v1255_v0  ;;  %339 = vst.msk [vmem:[#allocation3 + $0x18] sm:$0xff] (!%p235_p3), %vm331_vm2, %v1255_v0 }
   0xe   : > { %s1481_s15 = smov (!%p288_p4, %s1245_s15), 1 }
   0xf   : > { %s1322_s19 = sshll.u32 %s1481_s15, 2  ;;  %s1090_s26 = sshll.u32 %s1481_s15, 1 }
  0x10   : > { %s301_s22 = scalar_lea.vmem %s1470_s1, %s1322_s19  ;;  %s294_s25 = scalar_lea.vmem %s1469_s0, %s1322_s19  ;;  %v1365_v17 = vld [vmem:[#allocation2] sm:$0xff]  ;;  %v1414_v59 = vld [vmem:[#allocation2 + $0x8] sm:$0xff] }
  0x11   : > { %v346_v1 = vld [vmem:[%s301_s22] sm:$0xf]  ;;  %s318_s29 = scalar_lea.vmem %s1472_s3, %s1090_s26  ;;  %s308_s9 = scalar_lea.vmem %s1471_s2, %s1322_s19  ;;  %v678_v63 = vld [vmem:[#allocation2 + $0x10] sm:$0xff]  ;;  %v814_v4 = vld [vmem:[#allocation2 + $0x18] sm:$0xff] }
  0x12   : > { %v356_v2 = vsel %vm340_vm0, %v346_v1, 0  ;;  %v345_v3 = vld [vmem:[%s294_s25] sm:$0xf]  ;;  %v1095_v15 = vcombine.low %v346_v1, %v346_v1  ;;  %s325_s15 = scalar_lea.vmem %s1473_s4, %s1322_s19 }
  0x13   : > { %1122 = vmatpush3.bf16.xpose.msra.mxu0 %v356_v2  ;;  %v348_v5 = vld [vmem:[%s318_s29] sm:$0x3]  ;;  %v1094_v16 = vcombine.low %v345_v3, %v345_v3 }
  0x14   : > { %1139 = vmatprep.subr.bf16.mxu0 %v1255_v0  ;;  %v349_v6 = vunpack.c.0.s8 %v348_v5  ;;  %489 = vrot.lane.b32.xlu1 %v1095_v15, %s1259_s30  ;;  %v1379_v21 = vld [vmem:[%s308_s9] sm:$0xf] }
  0x15   : > { %v436_v22 = vsel %vm434_vm4, %v1379_v21, 0  ;;  %v1097_v7 = vcombine.low %v1379_v21, %v1379_v21 }
  0x16   : > { %vm1352_vm3 = vcmp.eq.s32.totalorder %v349_v6, 0  ;;  %1128 = vmatpush3.bf16.msra.mxu1 %v436_v22 }
  0x17   : > { %1133 = vmatprep.subr.bf16.mxu1 %v1255_v0 }
  0x18   : > { %484 = vrot.lane.b32.xlu1 %v1094_v16, %s1259_s30 }
  0x1a   : > { %1124 = vmatmul.mubr.msk.bf16.vlgmr.msra.gmra.mrb[0].mxu0 %vm340_vm0, %v345_v3 }
  0x1b   : > { %1141 = vmatprep.mubr.msk.bf16.mxu0 %vm1256_vm1, %v1255_v0 }
  0x1c   : > { %628 = vrot.lane.b32.xlu1 %v1095_v15, %s1260_s5 }
  0x20   : > { %626 = vrot.lane.b32.xlu1 %v1094_v16, %s1260_s5 }
  0x24   : > { %764 = vrot.lane.b32.xlu1 %v1095_v15, %s1261_s6 }
  0x28   : > { %762 = vrot.lane.b32.xlu1 %v1094_v16, %s1261_s6 }
  0x86   : > { %v490_v26 = vpop.permute.xlu1 %489 }
  0x87   : > { %v495_v29 = vsel %vm340_vm0, %v490_v26, 0 }
  0x8a   : > { %v485_v27 = vpop.permute.xlu1 %484 }
  0x8e   : > { %v629_v31 = vpop.permute.xlu1 %628 }
  0x8f   : > { %v634_v33 = vsel %vm340_vm0, %v629_v31, 0 }
  0x92   : > { %v627_v32 = vpop.permute.xlu1 %626 }
  0x96   : > { %v765_v34 = vpop.permute.xlu1 %764 }
  0x97   : > { %v770_v35 = vsel %vm340_vm0, %v765_v34, 0 }
  0x9a   : > { %v763_v36 = vpop.permute.xlu1 %762 }
  0xed   : > { %v392_v8 = vpop.f32.mrb[0].mxu0 }
  0xee   : > { %v398_v9 = vsel %vm1352_vm3, -1e+09, %v392_v8  ;;  %v1125_v10 = vpop.f32.mrb[1].mxu0 }
  0xef   : > { %v395_v11 = vpop.f32.mrb[2].mxu0  ;;  %v400_v12 = vsel %vm340_vm0, %v398_v9, -inf }
  0xf0   : > { %401 = vmax.xlane.f32.xlu0 %v400_v12  ;;  %v1126_v13 = vpop.f32.mrb[3].mxu0 }
 0x17d   : > { %v402_v18 = vpop.xlane.xlu0 %401 }
 0x17e   : > { %v1368_v19 = vmax.f32 %v1365_v17, %v402_v18 }
 0x180   : > { %v404_v20 = vsub.f32 %v1365_v17, %v1368_v19  ;;  %480 = vst.msk [vmem:[#allocation2] sm:$0xff] %vm331_vm2, %v1368_v19  ;;  %409 = vperm.xlu0 %1203, %v1368_v19  }
 0x1ff   : > { %v410_v23 = vpop.permute.xlu0 %409 }
 0x200   : > { %v412_v24 = vsub.f32 %v398_v9, %v410_v23 }
 0x202   : > { %v413_v25 = vmul.f32 1.442695, %v412_v24 }
 0x204   : > { %1207 = vpow2.f32 %v413_v25 }
 0x20e   : > { %v1384_v28 = vpop.eup %1207 }
 0x20f   : > { %v430_v30 = vpack.c.bf16 %v1384_v28, %v1384_v28  ;;  %v417_v9 = vsel %vm340_vm0, %v1384_v28, 0.0 }
 0x211   : > { %1130 = vmatmul.mubr.msk.bf16.vlgmr.msra.gmra.mrb[0].mxu1 %vm340_vm0, %v430_v30 }
 0x212   : > { %1134 = vmatpush3.bf16.xpose.msra.mxu1 %v495_v29  ;;  %1135 = vmatprep.mubr.msk.bf16.mxu1 %vm1256_vm1, %v1255_v0 }
 0x213   : > { %1145 = vmatprep.subr.bf16.mxu1 %v1255_v0 }
 0x219   : > { %1136 = vmatmul.mubr.msk.bf16.vlgmr.msra.gmra.mrb[4].mxu1 %vm340_vm0, %v485_v27 }
 0x21a   : > { %1146 = vmatpush3.bf16.xpose.msra.mxu1 %v634_v33  ;;  %1147 = vmatprep.mubr.msk.bf16.mxu1 %vm1256_vm1, %v1255_v0 }
 0x21b   : > { %1157 = vmatprep.subr.bf16.mxu1 %v1255_v0 }
 0x221   : > { %1148 = vmatmul.mubr.msk.bf16.vlgmr.msra.gmra.mrb[8].mxu1 %vm340_vm0, %v627_v32 }
 0x222   : > { %1158 = vmatpush3.bf16.xpose.msra.mxu1 %v770_v35  ;;  %1159 = vmatprep.mubr.msk.bf16.mxu1 %vm1256_vm1, %v1255_v0  ;;  %v405_v35 = vmul.f32 1.442695, %v404_v20 }
 0x229   : > { %1160 = vmatmul.mubr.msk.bf16.vlgmr.msra.gmra.mrb[12].mxu1 %vm340_vm0, %v763_v36 }
 0x2e4   : > { %v1403_v37 = vpop.f32.mrb[0].mxu1 }
 0x2e5   : > { %v1131_v38 = vpop.f32.mrb[1].mxu1 }
 0x2e6   : > { %v475_v39 = vpop.f32.mrb[2].mxu1 }
 0x2e7   : > { %v1132_v40 = vpop.f32.mrb[3].mxu1 }
 0x2ec   : > { %v531_v41 = vpop.f32.mrb[4].mxu1 }
 0x2ed   : > { %v537_v42 = vsel %vm1352_vm3, -1e+09, %v531_v41  ;;  %v1137_v43 = vpop.f32.mrb[5].mxu1 }
 0x2ee   : > { %v534_v44 = vpop.f32.mrb[6].mxu1  ;;  %v540_v45 = vsel %vm340_vm0, %v537_v42, -inf  ;;  %v415_v43 = vld [vmem:[#allocation3] sm:$0xff] }
 0x2ef   : > { %541 = vmax.xlane.f32.xlu1 %v540_v45  ;;  %v1138_v46 = vpop.f32.mrb[7].mxu1 }
 0x2f4   : > { %v670_v47 = vpop.f32.mrb[8].mxu1 }
 0x2f5   : > { %v676_v48 = vsel %vm1352_vm3, -1e+09, %v670_v47  ;;  %v1149_v49 = vpop.f32.mrb[9].mxu1 }
 0x2f6   : > { %v673_v50 = vpop.f32.mrb[10].mxu1  ;;  %v679_v51 = vsel %vm340_vm0, %v676_v48, -inf }
 0x2f7   : > { %680 = vmax.xlane.f32.xlu0 %v679_v51  ;;  %v1150_v52 = vpop.f32.mrb[11].mxu1 }
 0x2f8   : > { %v695_v52 = vld [vmem:[#allocation3 + $0x10] sm:$0xff] }
 0x2fc   : > { %v806_v53 = vpop.f32.mrb[12].mxu1 }
 0x2fd   : > { %v812_v54 = vsel %vm1352_vm3, -1e+09, %v806_v53  ;;  %v1161_v55 = vpop.f32.mrb[13].mxu1 }
 0x2fe   : > { %v809_v56 = vpop.f32.mrb[14].mxu1  ;;  %v815_v57 = vsel %vm340_vm0, %v812_v54, -inf }
 0x2ff   : > { %816 = vmax.xlane.f32.xlu1 %v815_v57  ;;  %v1162_v58 = vpop.f32.mrb[15].mxu1  ;;  %v831_v57 = vld [vmem:[#allocation3 + $0x18] sm:$0xff] }
 0x300   : > { %v423_v58 = vld [vmem:[#allocation4] sm:$0xff] }
 0x37c   : > { %v542_v60 = vpop.xlane.xlu1 %541 }
 0x37d   : > { %v543_v61 = vmax.f32 %v1414_v59, %v542_v60 }
 0x37f   : > { %v544_v62 = vsub.f32 %v1414_v59, %v543_v61  ;;  %625 = vst.msk [vmem:[#allocation2 + $0x8] sm:$0xff] %vm331_vm2, %v543_v61  ;;  %549 = vperm.xlu1 %1204, %v543_v61  }
 0x381   : > { %v545_v38 = vmul.f32 1.442695, %v544_v62 }
 0x384   : > { %v681_v1 = vpop.xlane.xlu0 %680 }
 0x385   : > { %v682_v2 = vmax.f32 %v678_v63, %v681_v1 }
 0x387   : > { %v683_v3 = vsub.f32 %v678_v63, %v682_v2  ;;  %761 = vst.msk [vmem:[#allocation2 + $0x10] sm:$0xff] %vm331_vm2, %v682_v2  ;;  %688 = vperm.xlu0 %1203, %v682_v2  }
 0x389   : > { %v684_v40 = vmul.f32 1.442695, %v683_v3 }
 0x38c   : > { %v817_v5 = vpop.xlane.xlu1 %816 }
 0x38d   : > { %v818_v6 = vmax.f32 %v814_v4, %v817_v5 }
 0x38f   : > { %v819_v8 = vsub.f32 %v814_v4, %v818_v6  ;;  %897 = vst.msk [vmem:[#allocation2 + $0x18] sm:$0xff] %vm331_vm2, %v818_v6  ;;  %824 = vperm.xlu1 %1204, %v818_v6  }
 0x391   : > { %v820_v39 = vmul.f32 1.442695, %v819_v8 }
 0x393   : > { %575 = vrot.lane.b32.xlu1 %v1097_v7, %s1259_s30 }
 0x397   : > { %711 = vrot.lane.b32.xlu1 %v1097_v7, %s1260_s5 }
 0x39b   : > { %847 = vrot.lane.b32.xlu1 %v1097_v7, %s1261_s6  ;;  %v564_v7 = vld [vmem:[#allocation4 + $0x8] sm:$0xff] }
 0x3bf   : > { %418 = vadd.xlane.f32.xlu1 %v417_v9 }
 0x3fe   : > { %v550_v10 = vpop.permute.xlu1 %549 }
 0x3ff   : > { %v552_v11 = vsub.f32 %v537_v42, %v550_v10 }
 0x401   : > { %v553_v12 = vmul.f32 1.442695, %v552_v11 }
 0x403   : > { %1209 = vpow2.f32 %v553_v12 }
 0x406   : > { %v689_v13 = vpop.permute.xlu0 %688 }
 0x407   : > { %v691_v14 = vsub.f32 %v676_v48, %v689_v13  ;;  %v556_v48 = vld [vmem:[#allocation3 + $0x8] sm:$0xff] }
 0x409   : > { %v692_v15 = vmul.f32 1.442695, %v691_v14  ;;  %v703_v14 = vld [vmem:[#allocation4 + $0x10] sm:$0xff] }
 0x40b   : > { %1211 = vpow2.f32 %v692_v15 }
 0x40d   : > { %v1210_v16 = vpop.eup %1209 }
 0x40e   : > { %v825_v18 = vpop.permute.xlu1 %824  ;;  %v558_v21 = vsel %vm340_vm0, %v1210_v16, 0.0  ;;  %v571_v27 = vpack.c.bf16 %v1210_v16, %v1210_v16 }
 0x40f   : > { %v827_v22 = vsub.f32 %v812_v54, %v825_v18  ;;  %559 = vadd.xlane.f32.xlu0 %v558_v21 }
 0x411   : > { %v828_v23 = vmul.f32 1.442695, %v827_v22 }
 0x412   : > { %v576_v24 = vpop.permute.xlu1 %575 }
 0x413   : > { %1213 = vpow2.f32 %v828_v23  ;;  %v581_v25 = vsel %vm434_vm4, %v576_v24, 0 }
 0x414   : > { %1140 = vmatpush3.bf16.msra.mxu0 %v581_v25  ;;  %1215 = vpow2.f32 %v405_v35  ;;  %v839_v25 = vld [vmem:[#allocation4 + $0x18] sm:$0xff] }
 0x415   : > { %v1212_v26 = vpop.eup %1211  ;;  %1151 = vmatprep.subr.bf16.mxu0 %v1255_v0  ;;  %1217 = vpow2.f32 %v545_v38 }
 0x416   : > { %v697_v28 = vsel %vm340_vm0, %v1212_v26, 0.0  ;;  %v712_v29 = vpop.permute.xlu1 %711  ;;  %v710_v33 = vpack.c.bf16 %v1212_v26, %v1212_v26  ;;  %1219 = vpow2.f32 %v820_v39 }
 0x417   : > { %698 = vadd.xlane.f32.xlu0 %v697_v28  ;;  %1142 = vmatmul.mubr.msk.bf16.vlgmr.msra.gmra.mrb[4].mxu0 %vm340_vm0, %v571_v27  ;;  %v717_v30 = vsel %vm434_vm4, %v712_v29, 0  ;;  %1221 = vpow2.f32 %v684_v40 }
 0x418   : > { %1152 = vmatpush3.bf16.msra.mxu0 %v717_v30  ;;  %1153 = vmatprep.mubr.msk.bf16.mxu0 %vm1256_vm1, %v1255_v0 }
 0x419   : > { %1163 = vmatprep.subr.bf16.mxu0 %v1255_v0 }
 0x41a   : > { %v848_v31 = vpop.permute.xlu1 %847 }
 0x41b   : > { %v853_v34 = vsel %vm434_vm4, %v848_v31, 0 }
 0x41d   : > { %v1214_v32 = vpop.eup %1213 }
 0x41e   : > { %v833_v36 = vsel %vm340_vm0, %v1214_v32, 0.0  ;;  %v846_v41 = vpack.c.bf16 %v1214_v32, %v1214_v32  ;;  %v1216_v17 = vpop.eup %1215 }
 0x41f   : > { %1154 = vmatmul.mubr.msk.bf16.vlgmr.msra.gmra.mrb[8].mxu0 %vm340_vm0, %v710_v33  ;;  %834 = vadd.xlane.f32.xlu1 %v833_v36  ;;  %v1218_v19 = vpop.eup %1217 }
 0x420   : > { %1164 = vmatpush3.bf16.msra.mxu0 %v853_v34  ;;  %1165 = vmatprep.mubr.msk.bf16.mxu0 %vm1256_vm1, %v1255_v0  ;;  %v1220_v20 = vpop.eup %1219  ;;  %v416_v0 = vmul.f32 %v1216_v17, %v415_v43  ;;  %v557_v49 = vmul.f32 %v1218_v19, %v556_v48 }
 0x421   : > { %v1222_v42 = vpop.eup %1221  ;;  %v832_v59 = vmul.f32 %v1220_v20, %v831_v57 }
 0x422   : > { %v696_v53 = vmul.f32 %v1222_v42, %v695_v52 }
 0x427   : > { %1166 = vmatmul.mubr.msk.bf16.vlgmr.msra.gmra.mrb[12].mxu0 %vm340_vm0, %v846_v41 }
 0x42d   : > { %426 = vperm.xlu0 %1203, %v1216_v17  }
 0x430   : > { %567 = vperm.xlu1 %1204, %v1218_v19  }
 0x431   : > { %842 = vperm.xlu0 %1203, %v1220_v20  }
 0x434   : > { %706 = vperm.xlu1 %1204, %v1222_v42  }
 0x44c   : > { %v419_v44 = vpop.xlane.xlu1 %418 }
 0x44d   : > { %v420_v45 = vadd.f32 %v419_v44, %v416_v0 }
 0x44f   : > { %422 = vst.msk [vmem:[#allocation3] sm:$0xff] %vm331_vm2, %v420_v45 }
 0x456   : > { %v901_v46 = vld [vmem:[#allocation3] sm:$0xff] }
 0x457   : > { %1223 = vrcp.f32 %v901_v46 }
 0x461   : > { %v1224_v47 = vpop.eup %1223 }
 0x462   : > { %906 = vperm.xlu1 %1204, %v1224_v47  }
 0x49c   : > { %v560_v50 = vpop.xlane.xlu0 %559 }
 0x49d   : > { %v561_v51 = vadd.f32 %v560_v50, %v557_v49 }
 0x49f   : > { %562 = vst.msk [vmem:[#allocation3 + $0x8] sm:$0xff] %vm331_vm2, %v561_v51 }
 0x4a4   : > { %v699_v54 = vpop.xlane.xlu0 %698 }
 0x4a5   : > { %v700_v55 = vadd.f32 %v699_v54, %v696_v53 }
 0x4a6   : > { %v910_v56 = vld [vmem:[#allocation3 + $0x8] sm:$0xff] }
 0x4a7   : > { %701 = vst.msk [vmem:[#allocation3 + $0x10] sm:$0xff] %vm331_vm2, %v700_v55  ;;  %1225 = vrcp.f32 %v910_v56 }
 0x4ac   : > { %v835_v60 = vpop.xlane.xlu1 %834  ;;  %v427_v61 = vpop.permute.xlu0 %426 }
 0x4ad   : > { %v836_v62 = vadd.f32 %v835_v60, %v832_v59  ;;  %v429_v63 = vmul.f32 %v427_v61, %v423_v58 }
 0x4ae   : > { %v919_v1 = vld [vmem:[#allocation3 + $0x10] sm:$0xff] }
 0x4af   : > { %837 = vst.msk [vmem:[#allocation3 + $0x18] sm:$0xff] %vm331_vm2, %v836_v62  ;;  %v478_v2 = vadd.f32 %v1403_v37, %v429_v63  ;;  %1227 = vrcp.f32 %v919_v1 }
 0x4b0   : > { %v568_v8 = vpop.permute.xlu1 %567  ;;  %v843_v26 = vpop.permute.xlu0 %842 }
 0x4b1   : > { %v1226_v3 = vpop.eup %1225  ;;  %479 = vst.msk [vmem:[#allocation4] sm:$0xff] %vm340_vm0, %v478_v2  ;;  %v570_v9 = vmul.f32 %v568_v8, %v564_v7  ;;  %v845_v27 = vmul.f32 %v843_v26, %v839_v25 }
 0x4b2   : > { %915 = vperm.xlu0 %1203, %v1226_v3  }
 0x4b4   : > { %v707_v15 = vpop.permute.xlu1 %706 }
 0x4b5   : > { %v709_v16 = vmul.f32 %v707_v15, %v703_v14 }
 0x4b6   : > { %v928_v4 = vld [vmem:[#allocation3 + $0x18] sm:$0xff] }
 0x4b7   : > { %1229 = vrcp.f32 %v928_v4 }
 0x4b8   : > { %v903_v20 = vld [vmem:[#allocation4] sm:$0xff] }
 0x4b9   : > { %v1228_v5 = vpop.eup %1227 }
 0x4ba   : > { %924 = vperm.xlu1 %1204, %v1228_v5  }
 0x4c1   : > { %v1230_v6 = vpop.eup %1229 }
 0x4c2   : > { %933 = vperm.xlu0 %1203, %v1230_v6  }
 0x4e1   : > { %v907_v36 = vpop.permute.xlu1 %906 }
 0x4e2   : > { %v909_v43 = vmul.f32 %v907_v36, %v903_v20 }
 0x4ea   : > { %v617_v10 = vpop.f32.mrb[4].mxu0 }
 0x4eb   : > { %v623_v11 = vadd.f32 %v617_v10, %v570_v9  ;;  %v1143_v12 = vpop.f32.mrb[5].mxu0 }
 0x4ec   : > { %v620_v13 = vpop.f32.mrb[6].mxu0 }
 0x4ed   : > { %624 = vst.msk [vmem:[#allocation4 + $0x8] sm:$0xff] %vm340_vm0, %v623_v11  ;;  %v1144_v37 = vpop.f32.mrb[7].mxu0 }
 0x4f2   : > { %v753_v18 = vpop.f32.mrb[8].mxu0 }
 0x4f3   : > { %v759_v21 = vadd.f32 %v753_v18, %v709_v16  ;;  %v1155_v22 = vpop.f32.mrb[9].mxu0 }
 0x4f4   : > { %v756_v23 = vpop.f32.mrb[10].mxu0  ;;  %v912_v34 = vld [vmem:[#allocation4 + $0x8] sm:$0xff] }
 0x4f5   : > { %760 = vst.msk [vmem:[#allocation4 + $0x10] sm:$0xff] %vm340_vm0, %v759_v21  ;;  %v1156_v24 = vpop.f32.mrb[11].mxu0 }
 0x4fa   : > { %v889_v28 = vpop.f32.mrb[12].mxu0 }
 0x4fb   : > { %v895_v29 = vadd.f32 %v889_v28, %v845_v27  ;;  %v1167_v30 = vpop.f32.mrb[13].mxu0 }
 0x4fc   : > { %v892_v31 = vpop.f32.mrb[14].mxu0  ;;  %v921_v39 = vld [vmem:[#allocation4 + $0x10] sm:$0xff] }
 0x4fd   : > { %896 = vst.msk [vmem:[#allocation4 + $0x18] sm:$0xff] %vm340_vm0, %v895_v29  ;;  %v1168_v32 = vpop.f32.mrb[15].mxu0 }
 0x504   : > { %v930_v17 = vld [vmem:[#allocation4 + $0x18] sm:$0xff] }
 0x531   : > { %v916_v33 = vpop.permute.xlu0 %915 }
 0x532   : > { %v918_v35 = vmul.f32 %v916_v33, %v912_v34 }
 0x534   : > { %938 = vrot.lane.b32.xlu1 %v918_v35, %s1262_s10 }
 0x539   : > { %v925_v38 = vpop.permute.xlu1 %924 }
 0x53a   : > { %v927_v40 = vmul.f32 %v925_v38, %v921_v39 }
 0x53c   : > { %942 = vrot.lane.b32.xlu0 %v927_v40, %s1263_s11 }
 0x541   : > { %v934_v41 = vpop.permute.xlu0 %933 }
 0x542   : > { %v936_v19 = vmul.f32 %v934_v41, %v930_v17 }
 0x544   : > { %946 = vrot.lane.b32.xlu1 %v936_v19, %s1264_s12 }
 0x5a6   : > { %v939_v42 = vpop.permute.xlu1 %938 }
 0x5a7   : > { %v949_v44 = vsel %vm340_vm0, %v909_v43, %v939_v42 }
 0x5ae   : > { %v943_v0 = vpop.permute.xlu0 %942 }
 0x5af   : > { %v951_v45 = vsel %vm950_vm5, %v949_v44, %v943_v0 }
 0x5b6   : > { %v947_v46 = vpop.permute.xlu1 %946 }
 0x5b7   : > { %v953_v47 = vsel %vm952_vm6, %v951_v45, %v947_v46 }
 0x5b8   : > { %v954_v48 = vpack.c.bf16 %v953_v47, %v953_v47 }
 0x5ba   : > { %956 = vst.msk [vmem:[%s325_s15] sm:$0xf] %vm955_vm7, %v954_v48 }
 0x5bb PF: > { %s14_s17 = sadd.s32 1, %s1253_s17   ;;  %s1476_s15 = smov %s1249_s16 }
 0x5bc   : > { %p11_p5 = scmp.ge.s32.totalorder %s14_s17, 4   ;;  %s1477_s16 = smov %s1479_s18 }
 0x5be   :  { %13 = sbr.rel (!%p11_p5) target bundleno = 2 (0x2), region = 92 }

</bundles_post_ra>
